<compile_context>
chip_gen: v6e
topology: v6e:2x2x1
jax: 0.10.0
libtpu: 0.0.40
codegen_flags: <defaults>
</compile_context>

<pallas_src>
import functools
import math

import numpy as np
import jax
import jax.numpy as jnp
from jax.experimental import pallas as pl
from jax.experimental.pallas import tpu as pltpu


# ----------------------------- tiling helpers -------------------------------

def _round_up(x, m):
    return ((x + m - 1) // m) * m


def _pick_tm(M, target):
    """Row tile: <= target, multiple of 16 (bf16 sublane packing), prefer /256."""
    if M <= target:
        return _round_up(max(M, 1), 16)
    for align in (256, 16):
        t = (target // align) * align
        while t >= align:
            if M % t == 0:
                return t
            t -= align
    return max((target // 16) * 16, 16)          # caller pads M


def _pick_tn(N, target):
    """Lane tile: <= target, multiple of 128, prefer /256; full dim if small."""
    if N <= target:
        return N                                  # full-dim block is always legal
    for align in (256, 128):
        t = (target // align) * align
        while t >= align:
            if N % t == 0:
                return t
            t -= align
    return max((target // 128) * 128, 128)        # caller pads N


def _vmem_limit(need_bytes):
    # valid on v5e (128 MiB phys), v6e (128 MiB) and v7x (64 MiB)
    return int(min(max(need_bytes + 8 * 2**20, 32 * 2**20), 48 * 2**20))


def _tile_plan(M, K, N, has_norm, has_bias, has_res, out_itemsize,
               budget=36 * 2**20):
    """Pick (tm, tn) so the double-buffered working set fits the VMEM budget."""
    tm_target, tn_target = 512, 512
    while True:
        tm = _pick_tm(M, tm_target)
        tn = _pick_tn(N, tn_target)
        need = 2 * (tm * K * 2 + K * tn * 2
                    + (tm * tn * 2 if has_res else 0)
                    + tm * tn * out_itemsize
                    + (K * 4 if has_norm else 0)
                    + (tn * 4 if has_bias else 0))
        if has_norm:
            need += tm * K * 2                    # single-buffered norm scratch
        if need <= budget or (tm_target <= 64 and tn_target <= 128):
            return tm, tn, need
        if tm_target > 64:
            tm_target //= 2
        else:
            tn_target //= 2


def _head_group(nh, dh):
    """Smallest head-group with a 128-lane-aligned footprint (else all heads)."""
    for g in range(1, nh + 1):
        if nh % g == 0 and (g * dh) % 128 == 0:
            return g
    return nh


# ------------------- fused (norm -> matmul -> epilogue) kernel --------------

def _fused_matmul_kernel(*refs, has_norm, has_bias, has_res, activation, eps):
    idx = 0
    x_ref = refs[idx]; idx += 1
    norm_ref = None
    if has_norm:
        norm_ref = refs[idx]; idx += 1
    w_ref = refs[idx]; idx += 1
    b_ref = None
    if has_bias:
        b_ref = refs[idx]; idx += 1
    res_ref = None
    if has_res:
        res_ref = refs[idx]; idx += 1
    o_ref = refs[idx]; idx += 1
    xn_ref = refs[idx] if has_norm else None      # VMEM scratch: cached norm(x)

    if has_norm:
        # T5 RMSNorm: f32 variance, no mean subtraction, no bias.
        # Compute once per row-tile (j == 0) and reuse across all N tiles.
        @pl.when(pl.program_id(1) == 0)
        def _():
            xf = x_ref[...].astype(jnp.float32)
            var = jnp.mean(xf * xf, axis=-1, keepdims=True)
            xn_ref[...] = (xf * jax.lax.rsqrt(var + eps)
                           * norm_ref[...]).astype(jnp.bfloat16)
        xv = xn_ref[...]
    else:
        xv = x_ref[...]

    acc = jnp.dot(xv, w_ref[...], preferred_element_type=jnp.float32)
    if has_bias:
        acc = acc + b_ref[...]
    if activation == "relu":
        acc = jnp.maximum(acc, 0.0)
    elif activation == "tanh":
        acc = jnp.tanh(acc)
    if has_res:
        acc = acc + res_ref[...].astype(jnp.float32)
    o_ref[...] = acc.astype(o_ref.dtype)


def fused_matmul(x, w, b=None, norm_w=None, residual=None, activation=None,
                 out_dtype=jnp.bfloat16, eps=1e-6):
    """out = act(RMSNorm(x) @ w + b) + residual, fully fused.

    x: (M, K); w: (K, N). bf16 MXU operands, f32 accumulation.
    K kept whole per block (required for the fused RMSNorm); M and N tiled,
    with zero-padding fallback when no aligned divisor exists.
    """
    M, K = x.shape
    K2, N = w.shape
    assert K == K2
    has_norm = norm_w is not None
    has_bias = b is not None
    has_res = residual is not None

    tm, tn, need = _tile_plan(M, K, N, has_norm, has_bias, has_res,
                              jnp.dtype(out_dtype).itemsize)
    Mp = _round_up(M, tm)
    Np = _round_up(N, tn)

    x_in = x.astype(jnp.bfloat16)
    if Mp != M:
        x_in = jnp.pad(x_in, ((0, Mp - M), (0, 0)))
    w_in = w.astype(jnp.bfloat16)
    if Np != N:
        w_in = jnp.pad(w_in, ((0, 0), (0, Np - N)))

    operands = [x_in]
    in_specs = [pl.BlockSpec((tm, K), lambda i, j: (i, 0))]
    if has_norm:
        operands.append(norm_w.reshape(1, K).astype(jnp.float32))
        in_specs.append(pl.BlockSpec((1, K), lambda i, j: (0, 0)))
    operands.append(w_in)
    in_specs.append(pl.BlockSpec((K, tn), lambda i, j: (0, j)))
    if has_bias:
        b_in = b.reshape(1, N).astype(jnp.float32)
        if Np != N:
            b_in = jnp.pad(b_in, ((0, 0), (0, Np - N)))
        operands.append(b_in)
        in_specs.append(pl.BlockSpec((1, tn), lambda i, j: (0, j)))
    if has_res:
        r_in = residual.astype(jnp.bfloat16)
        if Mp != M or Np != N:
            r_in = jnp.pad(r_in, ((0, Mp - M), (0, Np - N)))
        operands.append(r_in)
        in_specs.append(pl.BlockSpec((tm, tn), lambda i, j: (i, j)))

    scratch = [pltpu.VMEM((tm, K), jnp.bfloat16)] if has_norm else []

    kernel = functools.partial(
        _fused_matmul_kernel, has_norm=has_norm, has_bias=has_bias,
        has_res=has_res, activation=activation, eps=eps)

    out = pl.pallas_call(
        kernel,
        out_shape=jax.ShapeDtypeStruct((Mp, Np), out_dtype),
        grid=(Mp // tm, Np // tn),
        in_specs=in_specs,
        out_specs=pl.BlockSpec((tm, tn), lambda i, j: (i, j)),
        scratch_shapes=scratch,
        compiler_params=pltpu.CompilerParams(
            # j must be sequential when the norm scratch is cached across it
            dimension_semantics=("parallel", "arbitrary" if has_norm else "parallel"),
            vmem_limit_bytes=_vmem_limit(need)),
    )(*operands)

    if Mp != M or Np != N:
        out = out[:M, :N]
    return out


# ------------------------------ attention kernel -----------------------------

def _attn_kernel(qkv_ref, bias_ref, mask_ref, o_ref, *, gh, dh, tq):
    # T5 attention: no 1/sqrt(d) scaling; additive bias = rel-pos bias + key mask.
    qi = pl.program_id(1)
    q0 = pl.multiple_of(qi * tq, tq)
    ghd = gh * dh
    neg = (1.0 - mask_ref[0].astype(jnp.float32)) * (-1e9)       # (1, S) over keys
    outs = []
    for h in range(gh):                                          # static unroll (small)
        qh = qkv_ref[0, pl.ds(q0, tq), h * dh:(h + 1) * dh]      # (tq, dh) bf16
        kh = qkv_ref[0, :, ghd + h * dh:ghd + (h + 1) * dh]      # (S,  dh) bf16
        vh = qkv_ref[0, :, 2 * ghd + h * dh:2 * ghd + (h + 1) * dh]
        s = jax.lax.dot_general(qh, kh, (((1,), (1,)), ((), ())),
                                preferred_element_type=jnp.float32)     # (tq, S)
        s = s + bias_ref[h].astype(jnp.float32) + neg
        m = jnp.max(s, axis=-1, keepdims=True)
        p = jnp.exp(s - m)
        l = jnp.sum(p, axis=-1, keepdims=True)
        pv = jnp.dot(p.astype(jnp.bfloat16), vh,
                     preferred_element_type=jnp.float32)                # (tq, dh)
        # deferred normalization: scale the small (tq, dh) result, not (tq, S)
        outs.append(pv * pl.reciprocal(l, approx=True))
    # single lane-dense store of the whole head group
    o_ref[0] = jnp.concatenate(outs, axis=-1).astype(o_ref.dtype)


def _pick_tq(S, target=512):
    if S <= target:
        return S
    t = (target // 128) * 128
    while t >= 128:
        if S % t == 0:
            return t
        t -= 128
    return S


def pallas_attention(qkv, pos_bias, mask3, nh, dh, gh):
    """qkv: (B, S, 3*nh*dh) bf16, columns ordered [q_g | k_g | v_g] per head-group;
    pos_bias: (nh, S, S) bf16 (shared across batch); mask3: (B, 1, S) f32."""
    B, S, three_hd = qkv.shape
    Hd = nh * dh
    assert three_hd == 3 * Hd
    G = nh // gh
    tq = _pick_tq(S)
    QT = S // tq

    need = (2 * (S * 3 * gh * dh * 2 + gh * tq * S * 2 + S * 4 + tq * gh * dh * 2)
            + 2 * gh * tq * S * 4)                 # f32 score intermediates headroom

    kernel = functools.partial(_attn_kernel, gh=gh, dh=dh, tq=tq)
    # TODO(synk): for very long S (>2048) convert to a flash-style KV-tiled
    # online-softmax kernel; full-(S) key softmax per query tile is fine here.
    return pl.pallas_call(
        kernel,
        out_shape=jax.ShapeDtypeStruct((B, S, Hd), jnp.bfloat16),
        grid=(G, QT, B),
        in_specs=[
            # whole batch-row of the head-group's packed q|k|v (constant over qi)
            pl.BlockSpec((1, S, 3 * gh * dh), lambda g, qi, b: (b, 0, g)),
            # only this head-group / query-tile of the shared position bias (bf16)
            pl.BlockSpec((gh, tq, S), lambda g, qi, b: (g, qi, 0)),
            pl.BlockSpec((1, 1, S), lambda g, qi, b: (b, 0, 0)),
        ],
        out_specs=pl.BlockSpec((1, tq, gh * dh), lambda g, qi, b: (b, qi, g)),
        compiler_params=pltpu.CompilerParams(
            dimension_semantics=("parallel", "parallel", "parallel"),
            vmem_limit_bytes=_vmem_limit(need)),
    )(qkv, pos_bias, mask3)


# --------------------- fused classification head kernel ----------------------

def _cls_head_kernel(x_ref, ln_ref, w1_ref, b1_ref, w2_ref, b2_ref, o_ref, *, eps):
    # final RMSNorm -> dense -> tanh -> out_proj (dropout = identity in eval)
    xf = x_ref[...].astype(jnp.float32)
    var = jnp.mean(xf * xf, axis=-1, keepdims=True)
    xn = (xf * jax.lax.rsqrt(var + eps) * ln_ref[...]).astype(jnp.bfloat16)
    h = jnp.tanh(jnp.dot(xn, w1_ref[...], preferred_element_type=jnp.float32)
                 + b1_ref[...])
    logits = jnp.dot(h.astype(jnp.bfloat16), w2_ref[...],
                     preferred_element_type=jnp.float32) + b2_ref[...]
    o_ref[...] = logits


def classification_head(x, ln_f, w1, b1, w2, b2, eps=1e-6):
    M, D = x.shape
    L = w2.shape[1]
    Lp = max(128, _round_up(L, 128))              # lane-dense output stores
    w2p = jnp.pad(w2.astype(jnp.bfloat16), ((0, 0), (0, Lp - L)))
    b2p = jnp.pad(b2.reshape(1, L).astype(jnp.float32), ((0, 0), (0, Lp - L)))

    tm = _pick_tm(M, 512)
    Mp = _round_up(M, tm)
    x_in = x.astype(jnp.bfloat16)
    if Mp != M:
        x_in = jnp.pad(x_in, ((0, Mp - M), (0, 0)))

    need = 2 * (tm * D * 2 + D * 4 + D * D * 2 + D * 4 + D * Lp * 2 + Lp * 4
                + tm * Lp * 4) + tm * D * 6

    out = pl.pallas_call(
        functools.partial(_cls_head_kernel, eps=eps),
        out_shape=jax.ShapeDtypeStruct((Mp, Lp), jnp.float32),
        grid=(Mp // tm,),
        in_specs=[
            pl.BlockSpec((tm, D), lambda i: (i, 0)),
            pl.BlockSpec((1, D), lambda i: (0, 0)),
            pl.BlockSpec((D, D), lambda i: (0, 0)),
            pl.BlockSpec((1, D), lambda i: (0, 0)),
            pl.BlockSpec((D, Lp), lambda i: (0, 0)),
            pl.BlockSpec((1, Lp), lambda i: (0, 0)),
        ],
        out_specs=pl.BlockSpec((tm, Lp), lambda i: (i, 0)),
        compiler_params=pltpu.CompilerParams(
            dimension_semantics=("parallel",),
            vmem_limit_bytes=_vmem_limit(need)),
    )(x_in, ln_f.reshape(1, D).astype(jnp.float32), w1.astype(jnp.bfloat16),
      b1.reshape(1, D).astype(jnp.float32), w2p, b2p)
    return out[:M, :L]


# -------------------------- glue: params & position bias --------------------

def _relative_position_bucket(rel_pos, num_buckets, max_distance):
    # bidirectional (encoder-side) bucketing, as in HF T5
    nb = num_buckets // 2
    ret = (rel_pos > 0).astype(np.int32) * nb
    n = np.abs(rel_pos)
    max_exact = nb // 2
    is_small = n < max_exact
    n_safe = np.maximum(n, 1)
    val_if_large = max_exact + (
        np.log(n_safe / max_exact) / math.log(max_distance / max_exact)
        * (nb - max_exact)
    ).astype(np.int32)
    val_if_large = np.minimum(val_if_large, nb - 1)
    ret = ret + np.where(is_small, n, val_if_large)
    return ret.astype(np.int32)


def compute_position_bias(rel_bias_table, S, num_buckets, max_distance):
    ctx = np.arange(S)[:, None]
    mem = np.arange(S)[None, :]
    buckets = _relative_position_bucket(mem - ctx, num_buckets, max_distance)  # (S,S)
    bias = jnp.take(rel_bias_table, jnp.asarray(buckets), axis=0)   # (S, S, nh)
    # bf16 halves the dominant attention operand's DMA/VMEM bytes; softmax stays f32.
    return jnp.transpose(bias, (2, 0, 1)).astype(jnp.bfloat16)       # (nh, S, S)


def _fuse_qkv_weights(wq, wk, wv, nh, dh, gh):
    """Fuse Q/K/V projection weights once at init, column order per head-group:
    [q_{g}, k_{g}, v_{g}] so the attention kernel can address one group with a
    single lane-aligned BlockSpec block."""
    G = nh // gh
    cols = []
    for g in range(G):
        sl = slice(g * gh * dh, (g + 1) * gh * dh)
        cols += [wq[:, sl], wk[:, sl], wv[:, sl]]
    return jnp.concatenate(cols, axis=1)          # (D, 3*nh*dh)


def init_params(key, vocab, D, nh, dh, d_ff, n_layers, num_buckets, num_labels):
    gh = _head_group(nh, dh)
    keys = iter(jax.random.split(key, 8 + 8 * n_layers))

    def nrm(shape, scale=0.02):
        return scale * jax.random.normal(next(keys), shape, jnp.float32)

    layers = []
    for _ in range(n_layers):
        wq, wk, wv = nrm((D, nh * dh)), nrm((D, nh * dh)), nrm((D, nh * dh))
        layers.append(dict(
            ln1=jnp.ones((D,), jnp.float32),
            w_qkv=_fuse_qkv_weights(wq, wk, wv, nh, dh, gh),   # pre-fused at init
            wo=nrm((nh * dh, D)),
            ln2=jnp.ones((D,), jnp.float32),
            wi=nrm((D, d_ff)), wo_ff=nrm((d_ff, D)),
        ))
    return dict(
        embed=nrm((vocab, D)),
        rel_bias=nrm((num_buckets, nh)),
        layers=layers,
        ln_f=jnp.ones((D,), jnp.float32),
        cls_dense_w=nrm((D, D)), cls_dense_b=nrm((D,)),
        cls_out_w=nrm((D, num_labels)), cls_out_b=nrm((num_labels,)),
    )


# ------------------------------- forward pass -------------------------------

def t5_token_classifier_forward(params, input_ids, attention_mask,
                                nh, dh, num_buckets, max_distance):
    B, S = input_ids.shape
    D = params["embed"].shape[1]
    Hd = nh * dh
    gh = _head_group(nh, dh)

    # embedding lookup (glue; data-dependent gather done in plain JAX)
    x = jnp.take(params["embed"], input_ids, axis=0)
    x = x.astype(jnp.bfloat16).reshape(B * S, D)          # residual stream (bf16)

    # relative position bias (shared across layers & batch) + key mask
    pos_bias = compute_position_bias(params["rel_bias"], S, num_buckets, max_distance)
    mask3 = attention_mask.astype(jnp.float32).reshape(B, 1, S)

    for layer in params["layers"]:
        # --- self-attention block: fused RMSNorm + pre-fused QKV projection ---
        qkv = fused_matmul(x, layer["w_qkv"], norm_w=layer["ln1"])      # (B*S, 3*Hd)
        attn = pallas_attention(qkv.reshape(B, S, 3 * Hd), pos_bias, mask3, nh, dh, gh)
        # output projection with fused residual add (dropout = identity in eval)
        x = fused_matmul(attn.reshape(B * S, Hd), layer["wo"], residual=x)

        # --- feed-forward block: fused RMSNorm + dense-relu, then dense+residual ---
        hff = fused_matmul(x, layer["wi"], norm_w=layer["ln2"], activation="relu")
        x = fused_matmul(hff, layer["wo_ff"], residual=x)

    # final RMSNorm + classification head fused into one kernel
    logits = classification_head(x, params["ln_f"],
                                 params["cls_dense_w"], params["cls_dense_b"],
                                 params["cls_out_w"], params["cls_out_b"])
    logits = logits.reshape(B, S, -1)

    # logits.movedim(1, -1): (B, S, num_labels) -> (B, num_labels, S)
    return jnp.moveaxis(logits, 1, -1)


# TODO(synk): configure_optimizers() and parallelize()/device_map are training /
# device-placement only and have no effect on forward math; not translated.

if __name__ == "__main__":
    # small synthetic T5 config (lane-friendly head dim)
    VOCAB, D, NH, DH, DFF = 64, 64, 4, 64, 128
    N_LAYERS, NUM_BUCKETS, MAX_DIST, NUM_LABELS = 2, 8, 16, 9
    B, S = 2, 16

    key = jax.random.PRNGKey(0)
    k_params, k_ids = jax.random.split(key)
    params = init_params(k_params, VOCAB, D, NH, DH, DFF,
                         N_LAYERS, NUM_BUCKETS, NUM_LABELS)

    input_ids = jax.random.randint(k_ids, (B, S), 0, VOCAB, dtype=jnp.int32)
    attention_mask = jnp.ones((B, S), jnp.float32)

    fwd = jax.jit(t5_token_classifier_forward, static_argnums=(3, 4, 5, 6))
    logits = fwd(params, input_ids, attention_mask, NH, DH, NUM_BUCKETS, MAX_DIST)
    logits = jax.block_until_ready(logits)
    assert logits.shape == (B, NUM_LABELS, S), logits.shape
    assert bool(jnp.all(jnp.isfinite(logits)))
    print("KERNEL_OK")
</pallas_src>

<mosaic_0001>
module attributes {stable_mosaic.version = 11 : i64} {
  func.func @_fused_matmul_kernel(%arg0: i32, %arg1: i32, %arg2: memref<32x256xbf16, #tpu.memory_space<vmem>>, %arg3: memref<256x64xbf16, #tpu.memory_space<vmem>>, %arg4: memref<32x64xbf16, #tpu.memory_space<vmem>>, %arg5: memref<32x64xbf16, #tpu.memory_space<vmem>>) attributes {dimension_semantics = [#tpu.dimension_semantics<parallel>, #tpu.dimension_semantics<parallel>], iteration_bounds = array<i64: 1, 1>, scalar_prefetch = 0 : i64, scratch_operands = 0 : i64, tpu.core_type = #tpu.core_type<tc>, window_params = [{transform_indices = @transform_0, window_bounds = array<i64: 32, 256>}, {transform_indices = @transform_1, window_bounds = array<i64: 256, 64>}, {transform_indices = @transform_2, window_bounds = array<i64: 32, 64>}, {transform_indices = @transform_3, window_bounds = array<i64: 32, 64>}]} {
    %c0 = arith.constant 0 : index
    %c0_0 = arith.constant 0 : index
    %0 = vector.load %arg2[%c0, %c0_0] : memref<32x256xbf16, #tpu.memory_space<vmem>>, vector<32x256xbf16>
    %c0_1 = arith.constant 0 : index
    %c0_2 = arith.constant 0 : index
    %1 = vector.load %arg3[%c0_1, %c0_2] : memref<256x64xbf16, #tpu.memory_space<vmem>>, vector<256x64xbf16>
    %cst = arith.constant dense<0.000000e+00> : vector<32x64xf32>
    %2 = tpu.matmul %0, %1, %cst {dimension_numbers = #tpu.dot_dimension_numbers<[1], [0], [0], [1], [0, 0, 1, 1], [], []>} : vector<32x256xbf16>, vector<256x64xbf16>, vector<32x64xf32> -> vector<32x64xf32>
    %c0_3 = arith.constant 0 : index
    %c0_4 = arith.constant 0 : index
    %3 = vector.load %arg4[%c0_3, %c0_4] : memref<32x64xbf16, #tpu.memory_space<vmem>>, vector<32x64xbf16>
    %4 = arith.extf %3 : vector<32x64xbf16> to vector<32x64xf32>
    %5 = arith.addf %2, %4 : vector<32x64xf32>
    %6 = arith.truncf %5 : vector<32x64xf32> to vector<32x64xbf16>
    %c0_5 = arith.constant 0 : index
    %c0_6 = arith.constant 0 : index
    %7 = vector.load %arg5[%c0_5, %c0_6] : memref<32x64xbf16, #tpu.memory_space<vmem>>, vector<32x64xbf16>
    tpu.vector_store %arg5[%c0_5, %c0_6], %6 {strides = array<i32>} : memref<32x64xbf16, #tpu.memory_space<vmem>>, vector<32x64xbf16>,
    return
  }
  func.func @transform_0(%arg0: i32, %arg1: i32) -> (i32, i32) {
    %c0_i32 = arith.constant 0 : i32
    %c0_i32_0 = arith.constant 0 : i32
    return %arg0, %c0_i32 : i32, i32
  }
  func.func @transform_1(%arg0: i32, %arg1: i32) -> (i32, i32) {
    %c0_i32 = arith.constant 0 : i32
    %c0_i32_0 = arith.constant 0 : i32
    return %c0_i32, %arg1 : i32, i32
  }
  func.func @transform_2(%arg0: i32, %arg1: i32) -> (i32, i32) {
    %c0_i32 = arith.constant 0 : i32
    return %arg0, %arg1 : i32, i32
  }
  func.func @transform_3(%arg0: i32, %arg1: i32) -> (i32, i32) {
    %c0_i32 = arith.constant 0 : i32
    return %arg0, %arg1 : i32, i32
  }
}

module attributes {stable_mosaic.version = 11 : i64} {
  func.func @_attn_kernel(%arg0: i32, %arg1: i32, %arg2: i32, %arg3: memref<1x16x384xbf16, #tpu.memory_space<vmem>>, %arg4: memref<2x16x16xbf16, #tpu.memory_space<vmem>>, %arg5: memref<1x1x16xf32, #tpu.memory_space<vmem>>, %arg6: memref<1x16x128xbf16, #tpu.memory_space<vmem>>) attributes {dimension_semantics = [#tpu.dimension_semantics<parallel>, #tpu.dimension_semantics<parallel>, #tpu.dimension_semantics<parallel>], iteration_bounds = array<i64: 2, 1, 2>, scalar_prefetch = 0 : i64, scratch_operands = 0 : i64, tpu.core_type = #tpu.core_type<tc>, window_params = [{transform_indices = @transform_0, window_bounds = array<i64: 1, 16, 384>}, {transform_indices = @transform_1, window_bounds = array<i64: 2, 16, 16>}, {transform_indices = @transform_2, window_bounds = array<i64: 1, 1, 16>}, {transform_indices = @transform_3, window_bounds = array<i64: 1, 16, 128>}]} {
    %c16_i32 = arith.constant 16 : i32
    %0 = arith.muli %arg1, %c16_i32 : i32
    %1 = tpu.assume_multiple %0, 16 : i32
    %c0 = arith.constant 0 : index
    %c0_0 = arith.constant 0 : index
    %c0_1 = arith.constant 0 : index
    %2 = vector.load %arg5[%c0, %c0_0, %c0_1] : memref<1x1x16xf32, #tpu.memory_space<vmem>>, vector<1x1x16xf32>
    %3 = vector.shape_cast %2 : vector<1x1x16xf32> to vector<1x16xf32>
    %cst = arith.constant 1.000000e+00 : f32
    %4 = vector.broadcast %cst : f32 to vector<1x16xf32>
    %5 = arith.subf %4, %3 : vector<1x16xf32>
    %cst_2 = arith.constant -1.000000e+09 : f32
    %6 = vector.broadcast %cst_2 : f32 to vector<1x16xf32>
    %7 = arith.mulf %5, %6 : vector<1x16xf32>
    %c0_3 = arith.constant 0 : index
    %8 = arith.index_cast %1 : i32 to index
    %c0_4 = arith.constant 0 : index
    %9 = vector.load %arg3[%c0_3, %8, %c0_4] : memref<1x16x384xbf16, #tpu.memory_space<vmem>>, vector<1x16x64xbf16>
    %10 = vector.shape_cast %9 : vector<1x16x64xbf16> to vector<16x64xbf16>
    %c0_5 = arith.constant 0 : index
    %c0_6 = arith.constant 0 : index
    %c128 = arith.constant 128 : index
    %11 = vector.load %arg3[%c0_5, %c0_6, %c128] : memref<1x16x384xbf16, #tpu.memory_space<vmem>>, vector<1x16x64xbf16>
    %12 = vector.shape_cast %11 : vector<1x16x64xbf16> to vector<16x64xbf16>
    %c0_7 = arith.constant 0 : index
    %c0_8 = arith.constant 0 : index
    %c256 = arith.constant 256 : index
    %13 = vector.load %arg3[%c0_7, %c0_8, %c256] : memref<1x16x384xbf16, #tpu.memory_space<vmem>>, vector<1x16x64xbf16>
    %14 = vector.shape_cast %13 : vector<1x16x64xbf16> to vector<16x64xbf16>
    %cst_9 = arith.constant dense<0.000000e+00> : vector<16x16xf32>
    %15 = tpu.matmul %10, %12, %cst_9 {dimension_numbers = #tpu.dot_dimension_numbers<[1], [1], [0], [0], [0, 0, 1, 0], [], []>} : vector<16x64xbf16>, vector<16x64xbf16>, vector<16x16xf32> -> vector<16x16xf32>
    %c0_10 = arith.constant 0 : index
    %c0_11 = arith.constant 0 : index
    %c0_12 = arith.constant 0 : index
    %16 = vector.load %arg4[%c0_10, %c0_11, %c0_12] : memref<2x16x16xbf16, #tpu.memory_space<vmem>>, vector<1x16x16xbf16>
    %17 = vector.shape_cast %16 : vector<1x16x16xbf16> to vector<16x16xbf16>
    %18 = arith.extf %17 : vector<16x16xbf16> to vector<16x16xf32>
    %19 = arith.addf %15, %18 : vector<16x16xf32>
    %20 = vector.broadcast %7 : vector<1x16xf32> to vector<16x16xf32>
    %21 = arith.addf %19, %20 : vector<16x16xf32>
    %cst_13 = arith.constant dense<0xFF800000> : vector<16xf32>
    %22 = vector.multi_reduction <maximumf>, %21, %cst_13 [1] : vector<16x16xf32> to vector<16xf32>
    %23 = vector.shape_cast %22 : vector<16xf32> to vector<16x1xf32>
    %24 = vector.broadcast %23 : vector<16x1xf32> to vector<16x16xf32>
    %25 = arith.subf %21, %24 : vector<16x16xf32>
    %26 = math.exp %25 : vector<16x16xf32>
    %cst_14 = arith.constant dense<0.000000e+00> : vector<16xf32>
    %27 = vector.multi_reduction <add>, %26, %cst_14 [1] : vector<16x16xf32> to vector<16xf32>
    %28 = vector.shape_cast %27 : vector<16xf32> to vector<16x1xf32>
    %29 = arith.truncf %26 : vector<16x16xf32> to vector<16x16xbf16>
    %cst_15 = arith.constant dense<0.000000e+00> : vector<16x64xf32>
    %30 = tpu.matmul %29, %14, %cst_15 {dimension_numbers = #tpu.dot_dimension_numbers<[1], [0], [0], [1], [0, 0, 1, 1], [], []>} : vector<16x16xbf16>, vector<16x64xbf16>, vector<16x64xf32> -> vector<16x64xf32>
    %31 = tpu.reciprocal %28 {approx = true} : vector<16x1xf32> -> vector<16x1xf32>
    %32 = vector.broadcast %31 : vector<16x1xf32> to vector<16x64xf32>
    %33 = arith.mulf %30, %32 : vector<16x64xf32>
    %c0_16 = arith.constant 0 : index
    %34 = arith.index_cast %1 : i32 to index
    %c64 = arith.constant 64 : index
    %35 = vector.load %arg3[%c0_16, %34, %c64] : memref<1x16x384xbf16, #tpu.memory_space<vmem>>, vector<1x16x64xbf16>
    %36 = vector.shape_cast %35 : vector<1x16x64xbf16> to vector<16x64xbf16>
    %c0_17 = arith.constant 0 : index
    %c0_18 = arith.constant 0 : index
    %c192 = arith.constant 192 : index
    %37 = vector.load %arg3[%c0_17, %c0_18, %c192] : memref<1x16x384xbf16, #tpu.memory_space<vmem>>, vector<1x16x64xbf16>
    %38 = vector.shape_cast %37 : vector<1x16x64xbf16> to vector<16x64xbf16>
    %c0_19 = arith.constant 0 : index
    %c0_20 = arith.constant 0 : index
    %c320 = arith.constant 320 : index
    %39 = vector.load %arg3[%c0_19, %c0_20, %c320] : memref<1x16x384xbf16, #tpu.memory_space<vmem>>, vector<1x16x64xbf16>
    %40 = vector.shape_cast %39 : vector<1x16x64xbf16> to vector<16x64xbf16>
    %cst_21 = arith.constant dense<0.000000e+00> : vector<16x16xf32>
    %41 = tpu.matmul %36, %38, %cst_21 {dimension_numbers = #tpu.dot_dimension_numbers<[1], [1], [0], [0], [0, 0, 1, 0], [], []>} : vector<16x64xbf16>, vector<16x64xbf16>, vector<16x16xf32> -> vector<16x16xf32>
    %c1 = arith.constant 1 : index
    %c0_22 = arith.constant 0 : index
    %c0_23 = arith.constant 0 : index
    %42 = vector.load %arg4[%c1, %c0_22, %c0_23] : memref<2x16x16xbf16, #tpu.memory_space<vmem>>, vector<1x16x16xbf16>
    %43 = vector.shape_cast %42 : vector<1x16x16xbf16> to vector<16x16xbf16>
    %44 = arith.extf %43 : vector<16x16xbf16> to vector<16x16xf32>
    %45 = arith.addf %41, %44 : vector<16x16xf32>
    %46 = vector.broadcast %7 : vector<1x16xf32> to vector<16x16xf32>
    %47 = arith.addf %45, %46 : vector<16x16xf32>
    %cst_24 = arith.constant dense<0xFF800000> : vector<16xf32>
    %48 = vector.multi_reduction <maximumf>, %47, %cst_24 [1] : vector<16x16xf32> to vector<16xf32>
    %49 = vector.shape_cast %48 : vector<16xf32> to vector<16x1xf32>
    %50 = vector.broadcast %49 : vector<16x1xf32> to vector<16x16xf32>
    %51 = arith.subf %47, %50 : vector<16x16xf32>
    %52 = math.exp %51 : vector<16x16xf32>
    %cst_25 = arith.constant dense<0.000000e+00> : vector<16xf32>
    %53 = vector.multi_reduction <add>, %52, %cst_25 [1] : vector<16x16xf32> to vector<16xf32>
    %54 = vector.shape_cast %53 : vector<16xf32> to vector<16x1xf32>
    %55 = arith.truncf %52 : vector<16x16xf32> to vector<16x16xbf16>
    %cst_26 = arith.constant dense<0.000000e+00> : vector<16x64xf32>
    %56 = tpu.matmul %55, %40, %cst_26 {dimension_numbers = #tpu.dot_dimension_numbers<[1], [0], [0], [1], [0, 0, 1, 1], [], []>} : vector<16x16xbf16>, vector<16x64xbf16>, vector<16x64xf32> -> vector<16x64xf32>
    %57 = tpu.reciprocal %54 {approx = true} : vector<16x1xf32> -> vector<16x1xf32>
    %58 = vector.broadcast %57 : vector<16x1xf32> to vector<16x64xf32>
    %59 = arith.mulf %56, %58 : vector<16x64xf32>
    %60 = tpu.concatenate %33, %59 in 1 : vector<16x64xf32>, vector<16x64xf32> -> vector<16x128xf32>
    %61 = arith.truncf %60 : vector<16x128xf32> to vector<16x128xbf16>
    %c0_27 = arith.constant 0 : index
    %c0_28 = arith.constant 0 : index
    %c0_29 = arith.constant 0 : index
    %62 = vector.load %arg6[%c0_27, %c0_28, %c0_29] : memref<1x16x128xbf16, #tpu.memory_space<vmem>>, vector<1x16x128xbf16>
    %63 = vector.shape_cast %62 : vector<1x16x128xbf16> to vector<16x128xbf16>
    %64 = vector.shape_cast %61 : vector<16x128xbf16> to vector<1x16x128xbf16>
    tpu.vector_store %arg6[%c0_27, %c0_28, %c0_29], %64 {strides = array<i32>} : memref<1x16x128xbf16, #tpu.memory_space<vmem>>, vector<1x16x128xbf16>,
    return
  }
  func.func @transform_0(%arg0: i32, %arg1: i32, %arg2: i32) -> (i32, i32, i32) {
    %c0_i32 = arith.constant 0 : i32
    %c0_i32_0 = arith.constant 0 : i32
    return %arg2, %c0_i32, %arg0 : i32, i32, i32
  }
  func.func @transform_1(%arg0: i32, %arg1: i32, %arg2: i32) -> (i32, i32, i32) {
    %c0_i32 = arith.constant 0 : i32
    %c0_i32_0 = arith.constant 0 : i32
    return %arg0, %arg1, %c0_i32 : i32, i32, i32
  }
  func.func @transform_2(%arg0: i32, %arg1: i32, %arg2: i32) -> (i32, i32, i32) {
    %c0_i32 = arith.constant 0 : i32
    %c0_i32_0 = arith.constant 0 : i32
    %c0_i32_1 = arith.constant 0 : i32
    return %arg2, %c0_i32, %c0_i32_0 : i32, i32, i32
  }
  func.func @transform_3(%arg0: i32, %arg1: i32, %arg2: i32) -> (i32, i32, i32) {
    %c0_i32 = arith.constant 0 : i32
    return %arg2, %arg1, %arg0 : i32, i32, i32
  }
}

module attributes {stable_mosaic.version = 11 : i64} {
  func.func @_fused_matmul_kernel(%arg0: i32, %arg1: i32, %arg2: memref<32x64xbf16, #tpu.memory_space<vmem>>, %arg3: memref<1x64xf32, #tpu.memory_space<vmem>>, %arg4: memref<64x256xbf16, #tpu.memory_space<vmem>>, %arg5: memref<32x256xbf16, #tpu.memory_space<vmem>>, %arg6: memref<32x64xbf16, #tpu.memory_space<vmem>>) attributes {dimension_semantics = [#tpu.dimension_semantics<parallel>, #tpu.dimension_semantics<arbitrary>], iteration_bounds = array<i64: 1, 3>, scalar_prefetch = 0 : i64, scratch_operands = 1 : i64, tpu.core_type = #tpu.core_type<tc>, window_params = [{transform_indices = @transform_0, window_bounds = array<i64: 32, 64>}, {pipeline_mode = #tpu.pipeline_mode<synchronous>, transform_indices = @transform_1, window_bounds = array<i64: 1, 64>}, {transform_indices = @transform_2, window_bounds = array<i64: 64, 256>}, {transform_indices = @transform_3, window_bounds = array<i64: 32, 256>}]} {
    %c0_i32 = arith.constant 0 : i32
    %0 = arith.cmpi eq, %arg1, %c0_i32 : i32
    %1 = arith.extui %0 : i1 to i32
    %c0_i32_0 = arith.constant 0 : i32
    %2 = arith.cmpi ne, %1, %c0_i32_0 : i32
    scf.if %2 {
      %c0_6 = arith.constant 0 : index
      %c0_7 = arith.constant 0 : index
      %8 = vector.load %arg2[%c0_6, %c0_7] : memref<32x64xbf16, #tpu.memory_space<vmem>>, vector<32x64xbf16>
      %9 = arith.extf %8 : vector<32x64xbf16> to vector<32x64xf32>
      %10 = arith.mulf %9, %9 : vector<32x64xf32>
      %cst_8 = arith.constant dense<0.000000e+00> : vector<32xf32>
      %11 = vector.multi_reduction <add>, %10, %cst_8 [1] : vector<32x64xf32> to vector<32xf32>
      %12 = vector.shape_cast %11 : vector<32xf32> to vector<32x1xf32>
      %cst_9 = arith.constant 6.400000e+01 : f32
      %13 = vector.broadcast %cst_9 : f32 to vector<32x1xf32>
      %14 = arith.divf %12, %13 : vector<32x1xf32>
      %cst_10 = arith.constant 9.99999997E-7 : f32
      %15 = vector.broadcast %cst_10 : f32 to vector<32x1xf32>
      %16 = arith.addf %14, %15 : vector<32x1xf32>
      %17 = math.rsqrt %16 : vector<32x1xf32>
      %18 = vector.broadcast %17 : vector<32x1xf32> to vector<32x64xf32>
      %19 = arith.mulf %9, %18 : vector<32x64xf32>
      %c0_11 = arith.constant 0 : index
      %c0_12 = arith.constant 0 : index
      %20 = vector.load %arg3[%c0_11, %c0_12] : memref<1x64xf32, #tpu.memory_space<vmem>>, vector<1x64xf32>
      %21 = vector.broadcast %20 : vector<1x64xf32> to vector<32x64xf32>
      %22 = arith.mulf %19, %21 : vector<32x64xf32>
      %23 = arith.truncf %22 : vector<32x64xf32> to vector<32x64xbf16>
      %c0_13 = arith.constant 0 : index
      %c0_14 = arith.constant 0 : index
      %24 = vector.load %arg6[%c0_13, %c0_14] : memref<32x64xbf16, #tpu.memory_space<vmem>>, vector<32x64xbf16>
      tpu.vector_store %arg6[%c0_13, %c0_14], %23 {strides = array<i32>} : memref<32x64xbf16, #tpu.memory_space<vmem>>, vector<32x64xbf16>,
    } else {
    }
    %c0 = arith.constant 0 : index
    %c0_1 = arith.constant 0 : index
    %3 = vector.load %arg6[%c0, %c0_1] : memref<32x64xbf16, #tpu.memory_space<vmem>>, vector<32x64xbf16>
    %c0_2 = arith.constant 0 : index
    %c0_3 = arith.constant 0 : index
    %4 = vector.load %arg4[%c0_2, %c0_3] : memref<64x256xbf16, #tpu.memory_space<vmem>>, vector<64x256xbf16>
    %cst = arith.constant dense<0.000000e+00> : vector<32x256xf32>
    %5 = tpu.matmul %3, %4, %cst {dimension_numbers = #tpu.dot_dimension_numbers<[1], [0], [0], [1], [0, 0, 1, 1], [], []>} : vector<32x64xbf16>, vector<64x256xbf16>, vector<32x256xf32> -> vector<32x256xf32>
    %6 = arith.truncf %5 : vector<32x256xf32> to vector<32x256xbf16>
    %c0_4 = arith.constant 0 : index
    %c0_5 = arith.constant 0 : index
    %7 = vector.load %arg5[%c0_4, %c0_5] : memref<32x256xbf16, #tpu.memory_space<vmem>>, vector<32x256xbf16>
    tpu.vector_store %arg5[%c0_4, %c0_5], %6 {strides = array<i32>} : memref<32x256xbf16, #tpu.memory_space<vmem>>, vector<32x256xbf16>,
    return
  }
  func.func @transform_0(%arg0: i32, %arg1: i32) -> (i32, i32) {
    %c0_i32 = arith.constant 0 : i32
    %c0_i32_0 = arith.constant 0 : i32
    return %arg0, %c0_i32 : i32, i32
  }
  func.func @transform_1(%arg0: i32, %arg1: i32) -> (i32, i32) {
    %c0_i32 = arith.constant 0 : i32
    %c0_i32_0 = arith.constant 0 : i32
    %c0_i32_1 = arith.constant 0 : i32
    return %c0_i32, %c0_i32_0 : i32, i32
  }
  func.func @transform_2(%arg0: i32, %arg1: i32) -> (i32, i32) {
    %c0_i32 = arith.constant 0 : i32
    %c0_i32_0 = arith.constant 0 : i32
    return %c0_i32, %arg1 : i32, i32
  }
  func.func @transform_3(%arg0: i32, %arg1: i32) -> (i32, i32) {
    %c0_i32 = arith.constant 0 : i32
    return %arg0, %arg1 : i32, i32
  }
}

module attributes {stable_mosaic.version = 11 : i64} {
  func.func @_fused_matmul_kernel(%arg0: i32, %arg1: i32, %arg2: memref<32x64xbf16, #tpu.memory_space<vmem>>, %arg3: memref<1x64xf32, #tpu.memory_space<vmem>>, %arg4: memref<64x128xbf16, #tpu.memory_space<vmem>>, %arg5: memref<32x128xbf16, #tpu.memory_space<vmem>>, %arg6: memref<32x64xbf16, #tpu.memory_space<vmem>>) attributes {dimension_semantics = [#tpu.dimension_semantics<parallel>, #tpu.dimension_semantics<arbitrary>], iteration_bounds = array<i64: 1, 1>, scalar_prefetch = 0 : i64, scratch_operands = 1 : i64, tpu.core_type = #tpu.core_type<tc>, window_params = [{transform_indices = @transform_0, window_bounds = array<i64: 32, 64>}, {pipeline_mode = #tpu.pipeline_mode<synchronous>, transform_indices = @transform_1, window_bounds = array<i64: 1, 64>}, {transform_indices = @transform_2, window_bounds = array<i64: 64, 128>}, {transform_indices = @transform_3, window_bounds = array<i64: 32, 128>}]} {
    %c0_i32 = arith.constant 0 : i32
    %0 = arith.cmpi eq, %arg1, %c0_i32 : i32
    %1 = arith.extui %0 : i1 to i32
    %c0_i32_0 = arith.constant 0 : i32
    %2 = arith.cmpi ne, %1, %c0_i32_0 : i32
    scf.if %2 {
      %c0_7 = arith.constant 0 : index
      %c0_8 = arith.constant 0 : index
      %10 = vector.load %arg2[%c0_7, %c0_8] : memref<32x64xbf16, #tpu.memory_space<vmem>>, vector<32x64xbf16>
      %11 = arith.extf %10 : vector<32x64xbf16> to vector<32x64xf32>
      %12 = arith.mulf %11, %11 : vector<32x64xf32>
      %cst_9 = arith.constant dense<0.000000e+00> : vector<32xf32>
      %13 = vector.multi_reduction <add>, %12, %cst_9 [1] : vector<32x64xf32> to vector<32xf32>
      %14 = vector.shape_cast %13 : vector<32xf32> to vector<32x1xf32>
      %cst_10 = arith.constant 6.400000e+01 : f32
      %15 = vector.broadcast %cst_10 : f32 to vector<32x1xf32>
      %16 = arith.divf %14, %15 : vector<32x1xf32>
      %cst_11 = arith.constant 9.99999997E-7 : f32
      %17 = vector.broadcast %cst_11 : f32 to vector<32x1xf32>
      %18 = arith.addf %16, %17 : vector<32x1xf32>
      %19 = math.rsqrt %18 : vector<32x1xf32>
      %20 = vector.broadcast %19 : vector<32x1xf32> to vector<32x64xf32>
      %21 = arith.mulf %11, %20 : vector<32x64xf32>
      %c0_12 = arith.constant 0 : index
      %c0_13 = arith.constant 0 : index
      %22 = vector.load %arg3[%c0_12, %c0_13] : memref<1x64xf32, #tpu.memory_space<vmem>>, vector<1x64xf32>
      %23 = vector.broadcast %22 : vector<1x64xf32> to vector<32x64xf32>
      %24 = arith.mulf %21, %23 : vector<32x64xf32>
      %25 = arith.truncf %24 : vector<32x64xf32> to vector<32x64xbf16>
      %c0_14 = arith.constant 0 : index
      %c0_15 = arith.constant 0 : index
      %26 = vector.load %arg6[%c0_14, %c0_15] : memref<32x64xbf16, #tpu.memory_space<vmem>>, vector<32x64xbf16>
      tpu.vector_store %arg6[%c0_14, %c0_15], %25 {strides = array<i32>} : memref<32x64xbf16, #tpu.memory_space<vmem>>, vector<32x64xbf16>,
    } else {
    }
    %c0 = arith.constant 0 : index
    %c0_1 = arith.constant 0 : index
    %3 = vector.load %arg6[%c0, %c0_1] : memref<32x64xbf16, #tpu.memory_space<vmem>>, vector<32x64xbf16>
    %c0_2 = arith.constant 0 : index
    %c0_3 = arith.constant 0 : index
    %4 = vector.load %arg4[%c0_2, %c0_3] : memref<64x128xbf16, #tpu.memory_space<vmem>>, vector<64x128xbf16>
    %cst = arith.constant dense<0.000000e+00> : vector<32x128xf32>
    %5 = tpu.matmul %3, %4, %cst {dimension_numbers = #tpu.dot_dimension_numbers<[1], [0], [0], [1], [0, 0, 1, 1], [], []>} : vector<32x64xbf16>, vector<64x128xbf16>, vector<32x128xf32> -> vector<32x128xf32>
    %cst_4 = arith.constant 0.000000e+00 : f32
    %6 = vector.broadcast %cst_4 : f32 to vector<32x128xf32>
    %7 = arith.maximumf %5, %6 : vector<32x128xf32>
    %8 = arith.truncf %7 : vector<32x128xf32> to vector<32x128xbf16>
    %c0_5 = arith.constant 0 : index
    %c0_6 = arith.constant 0 : index
    %9 = vector.load %arg5[%c0_5, %c0_6] : memref<32x128xbf16, #tpu.memory_space<vmem>>, vector<32x128xbf16>
    tpu.vector_store %arg5[%c0_5, %c0_6], %8 {strides = array<i32>} : memref<32x128xbf16, #tpu.memory_space<vmem>>, vector<32x128xbf16>,
    return
  }
  func.func @transform_0(%arg0: i32, %arg1: i32) -> (i32, i32) {
    %c0_i32 = arith.constant 0 : i32
    %c0_i32_0 = arith.constant 0 : i32
    return %arg0, %c0_i32 : i32, i32
  }
  func.func @transform_1(%arg0: i32, %arg1: i32) -> (i32, i32) {
    %c0_i32 = arith.constant 0 : i32
    %c0_i32_0 = arith.constant 0 : i32
    %c0_i32_1 = arith.constant 0 : i32
    return %c0_i32, %c0_i32_0 : i32, i32
  }
  func.func @transform_2(%arg0: i32, %arg1: i32) -> (i32, i32) {
    %c0_i32 = arith.constant 0 : i32
    %c0_i32_0 = arith.constant 0 : i32
    return %c0_i32, %arg1 : i32, i32
  }
  func.func @transform_3(%arg0: i32, %arg1: i32) -> (i32, i32) {
    %c0_i32 = arith.constant 0 : i32
    return %arg0, %arg1 : i32, i32
  }
}

module attributes {stable_mosaic.version = 11 : i64} {
  func.func @_fused_matmul_kernel(%arg0: i32, %arg1: i32, %arg2: memref<32x128xbf16, #tpu.memory_space<vmem>>, %arg3: memref<128x64xbf16, #tpu.memory_space<vmem>>, %arg4: memref<32x64xbf16, #tpu.memory_space<vmem>>, %arg5: memref<32x64xbf16, #tpu.memory_space<vmem>>) attributes {dimension_semantics = [#tpu.dimension_semantics<parallel>, #tpu.dimension_semantics<parallel>], iteration_bounds = array<i64: 1, 1>, scalar_prefetch = 0 : i64, scratch_operands = 0 : i64, tpu.core_type = #tpu.core_type<tc>, window_params = [{transform_indices = @transform_0, window_bounds = array<i64: 32, 128>}, {transform_indices = @transform_1, window_bounds = array<i64: 128, 64>}, {transform_indices = @transform_2, window_bounds = array<i64: 32, 64>}, {transform_indices = @transform_3, window_bounds = array<i64: 32, 64>}]} {
    %c0 = arith.constant 0 : index
    %c0_0 = arith.constant 0 : index
    %0 = vector.load %arg2[%c0, %c0_0] : memref<32x128xbf16, #tpu.memory_space<vmem>>, vector<32x128xbf16>
    %c0_1 = arith.constant 0 : index
    %c0_2 = arith.constant 0 : index
    %1 = vector.load %arg3[%c0_1, %c0_2] : memref<128x64xbf16, #tpu.memory_space<vmem>>, vector<128x64xbf16>
    %cst = arith.constant dense<0.000000e+00> : vector<32x64xf32>
    %2 = tpu.matmul %0, %1, %cst {dimension_numbers = #tpu.dot_dimension_numbers<[1], [0], [0], [1], [0, 0, 1, 1], [], []>} : vector<32x128xbf16>, vector<128x64xbf16>, vector<32x64xf32> -> vector<32x64xf32>
    %c0_3 = arith.constant 0 : index
    %c0_4 = arith.constant 0 : index
    %3 = vector.load %arg4[%c0_3, %c0_4] : memref<32x64xbf16, #tpu.memory_space<vmem>>, vector<32x64xbf16>
    %4 = arith.extf %3 : vector<32x64xbf16> to vector<32x64xf32>
    %5 = arith.addf %2, %4 : vector<32x64xf32>
    %6 = arith.truncf %5 : vector<32x64xf32> to vector<32x64xbf16>
    %c0_5 = arith.constant 0 : index
    %c0_6 = arith.constant 0 : index
    %7 = vector.load %arg5[%c0_5, %c0_6] : memref<32x64xbf16, #tpu.memory_space<vmem>>, vector<32x64xbf16>
    tpu.vector_store %arg5[%c0_5, %c0_6], %6 {strides = array<i32>} : memref<32x64xbf16, #tpu.memory_space<vmem>>, vector<32x64xbf16>,
    return
  }
  func.func @transform_0(%arg0: i32, %arg1: i32) -> (i32, i32) {
    %c0_i32 = arith.constant 0 : i32
    %c0_i32_0 = arith.constant 0 : i32
    return %arg0, %c0_i32 : i32, i32
  }
  func.func @transform_1(%arg0: i32, %arg1: i32) -> (i32, i32) {
    %c0_i32 = arith.constant 0 : i32
    %c0_i32_0 = arith.constant 0 : i32
    return %c0_i32, %arg1 : i32, i32
  }
  func.func @transform_2(%arg0: i32, %arg1: i32) -> (i32, i32) {
    %c0_i32 = arith.constant 0 : i32
    return %arg0, %arg1 : i32, i32
  }
  func.func @transform_3(%arg0: i32, %arg1: i32) -> (i32, i32) {
    %c0_i32 = arith.constant 0 : i32
    return %arg0, %arg1 : i32, i32
  }
}

module attributes {stable_mosaic.version = 11 : i64} {
  func.func @_cls_head_kernel(%arg0: i32, %arg1: memref<32x64xbf16, #tpu.memory_space<vmem>>, %arg2: memref<1x64xf32, #tpu.memory_space<vmem>>, %arg3: memref<64x64xbf16, #tpu.memory_space<vmem>>, %arg4: memref<1x64xf32, #tpu.memory_space<vmem>>, %arg5: memref<64x128xbf16, #tpu.memory_space<vmem>>, %arg6: memref<1x128xf32, #tpu.memory_space<vmem>>, %arg7: memref<32x128xf32, #tpu.memory_space<vmem>>) attributes {dimension_semantics = [#tpu.dimension_semantics<parallel>], iteration_bounds = array<i64: 1>, scalar_prefetch = 0 : i64, scratch_operands = 0 : i64, tpu.core_type = #tpu.core_type<tc>, window_params = [{transform_indices = @transform_0, window_bounds = array<i64: 32, 64>}, {pipeline_mode = #tpu.pipeline_mode<synchronous>, transform_indices = @transform_1, window_bounds = array<i64: 1, 64>}, {pipeline_mode = #tpu.pipeline_mode<synchronous>, transform_indices = @transform_2, window_bounds = array<i64: 64, 64>}, {pipeline_mode = #tpu.pipeline_mode<synchronous>, transform_indices = @transform_3, window_bounds = array<i64: 1, 64>}, {pipeline_mode = #tpu.pipeline_mode<synchronous>, transform_indices = @transform_4, window_bounds = array<i64: 64, 128>}, {pipeline_mode = #tpu.pipeline_mode<synchronous>, transform_indices = @transform_5, window_bounds = array<i64: 1, 128>}, {transform_indices = @transform_6, window_bounds = array<i64: 32, 128>}]} {
    %c0 = arith.constant 0 : index
    %c0_0 = arith.constant 0 : index
    %0 = vector.load %arg1[%c0, %c0_0] : memref<32x64xbf16, #tpu.memory_space<vmem>>, vector<32x64xbf16>
    %1 = arith.extf %0 : vector<32x64xbf16> to vector<32x64xf32>
    %2 = arith.mulf %1, %1 : vector<32x64xf32>
    %cst = arith.constant dense<0.000000e+00> : vector<32xf32>
    %3 = vector.multi_reduction <add>, %2, %cst [1] : vector<32x64xf32> to vector<32xf32>
    %4 = vector.shape_cast %3 : vector<32xf32> to vector<32x1xf32>
    %cst_1 = arith.constant 6.400000e+01 : f32
    %5 = vector.broadcast %cst_1 : f32 to vector<32x1xf32>
    %6 = arith.divf %4, %5 : vector<32x1xf32>
    %cst_2 = arith.constant 9.99999997E-7 : f32
    %7 = vector.broadcast %cst_2 : f32 to vector<32x1xf32>
    %8 = arith.addf %6, %7 : vector<32x1xf32>
    %9 = math.rsqrt %8 : vector<32x1xf32>
    %10 = vector.broadcast %9 : vector<32x1xf32> to vector<32x64xf32>
    %11 = arith.mulf %1, %10 : vector<32x64xf32>
    %c0_3 = arith.constant 0 : index
    %c0_4 = arith.constant 0 : index
    %12 = vector.load %arg2[%c0_3, %c0_4] : memref<1x64xf32, #tpu.memory_space<vmem>>, vector<1x64xf32>
    %13 = vector.broadcast %12 : vector<1x64xf32> to vector<32x64xf32>
    %14 = arith.mulf %11, %13 : vector<32x64xf32>
    %15 = arith.truncf %14 : vector<32x64xf32> to vector<32x64xbf16>
    %c0_5 = arith.constant 0 : index
    %c0_6 = arith.constant 0 : index
    %16 = vector.load %arg3[%c0_5, %c0_6] : memref<64x64xbf16, #tpu.memory_space<vmem>>, vector<64x64xbf16>
    %cst_7 = arith.constant dense<0.000000e+00> : vector<32x64xf32>
    %17 = tpu.matmul %15, %16, %cst_7 {dimension_numbers = #tpu.dot_dimension_numbers<[1], [0], [0], [1], [0, 0, 1, 1], [], []>} : vector<32x64xbf16>, vector<64x64xbf16>, vector<32x64xf32> -> vector<32x64xf32>
    %c0_8 = arith.constant 0 : index
    %c0_9 = arith.constant 0 : index
    %18 = vector.load %arg4[%c0_8, %c0_9] : memref<1x64xf32, #tpu.memory_space<vmem>>, vector<1x64xf32>
    %19 = vector.broadcast %18 : vector<1x64xf32> to vector<32x64xf32>
    %20 = arith.addf %17, %19 : vector<32x64xf32>
    %21 = math.tanh %20 : vector<32x64xf32>
    %22 = arith.truncf %21 : vector<32x64xf32> to vector<32x64xbf16>
    %c0_10 = arith.constant 0 : index
    %c0_11 = arith.constant 0 : index
    %23 = vector.load %arg5[%c0_10, %c0_11] : memref<64x128xbf16, #tpu.memory_space<vmem>>, vector<64x128xbf16>
    %cst_12 = arith.constant dense<0.000000e+00> : vector<32x128xf32>
    %24 = tpu.matmul %22, %23, %cst_12 {dimension_numbers = #tpu.dot_dimension_numbers<[1], [0], [0], [1], [0, 0, 1, 1], [], []>} : vector<32x64xbf16>, vector<64x128xbf16>, vector<32x128xf32> -> vector<32x128xf32>
    %c0_13 = arith.constant 0 : index
    %c0_14 = arith.constant 0 : index
    %25 = vector.load %arg6[%c0_13, %c0_14] : memref<1x128xf32, #tpu.memory_space<vmem>>, vector<1x128xf32>
    %26 = vector.broadcast %25 : vector<1x128xf32> to vector<32x128xf32>
    %27 = arith.addf %24, %26 : vector<32x128xf32>
    %c0_15 = arith.constant 0 : index
    %c0_16 = arith.constant 0 : index
    %28 = vector.load %arg7[%c0_15, %c0_16] : memref<32x128xf32, #tpu.memory_space<vmem>>, vector<32x128xf32>
    tpu.vector_store %arg7[%c0_15, %c0_16], %27 {strides = array<i32>} : memref<32x128xf32, #tpu.memory_space<vmem>>, vector<32x128xf32>,
    return
  }
  func.func @transform_0(%arg0: i32) -> (i32, i32) {
    %c0_i32 = arith.constant 0 : i32
    %c0_i32_0 = arith.constant 0 : i32
    return %arg0, %c0_i32 : i32, i32
  }
  func.func @transform_1(%arg0: i32) -> (i32, i32) {
    %c0_i32 = arith.constant 0 : i32
    %c0_i32_0 = arith.constant 0 : i32
    %c0_i32_1 = arith.constant 0 : i32
    return %c0_i32, %c0_i32_0 : i32, i32
  }
  func.func @transform_2(%arg0: i32) -> (i32, i32) {
    %c0_i32 = arith.constant 0 : i32
    %c0_i32_0 = arith.constant 0 : i32
    %c0_i32_1 = arith.constant 0 : i32
    return %c0_i32, %c0_i32_0 : i32, i32
  }
  func.func @transform_3(%arg0: i32) -> (i32, i32) {
    %c0_i32 = arith.constant 0 : i32
    %c0_i32_0 = arith.constant 0 : i32
    %c0_i32_1 = arith.constant 0 : i32
    return %c0_i32, %c0_i32_0 : i32, i32
  }
  func.func @transform_4(%arg0: i32) -> (i32, i32) {
    %c0_i32 = arith.constant 0 : i32
    %c0_i32_0 = arith.constant 0 : i32
    %c0_i32_1 = arith.constant 0 : i32
    return %c0_i32, %c0_i32_0 : i32, i32
  }
  func.func @transform_5(%arg0: i32) -> (i32, i32) {
    %c0_i32 = arith.constant 0 : i32
    %c0_i32_0 = arith.constant 0 : i32
    %c0_i32_1 = arith.constant 0 : i32
    return %c0_i32, %c0_i32_0 : i32, i32
  }
  func.func @transform_6(%arg0: i32) -> (i32, i32) {
    %c0_i32 = arith.constant 0 : i32
    %c0_i32_0 = arith.constant 0 : i32
    return %arg0, %c0_i32 : i32, i32
  }
}

</mosaic_0001>

<bundles_post_ra>
// kernel: t5_token_classifier_forward.12
= control target key start
LH: loop header
LB: loop body
LE: loop exit
PB: predicated region body
PF: predicated region fallthrough
CT: control target
= control target key end

     0   :  { %s1007_s12 = smov 0   ;;  %s1009_s13 = smov 0   ;;  %s1160_s0 = inlined_call_operand.vmem [shape: bf16[2,16,768], index: 0, kind: input, shape index: {}]   ;;  %s1161_s1 = inlined_call_operand.vmem [shape: bf16[4,16,16], index: 1, kind: input, shape index: {}]   ;;  %s1162_s2 = inlined_call_operand.vmem [shape: f32[2,1,16], index: 2, kind: input, shape index: {}]   ;;  %s1163_s3 = inlined_call_operand.vmem [shape: bf16[2,16,256], index: 3, kind: output, shape index: {}]  }
   0x1   :  { %s1011_s14 = smov 0   ;;  %s1013_s15 = smov 0  }
   0x2   :  { %s1015_s16 = smov 0   ;;  %s1017_s17 = smov 0  }
   0x3   :  { %s1019_s18 = smov 0  }
   0x4 LB: > { %s25_s19 = sadd.s32 1, %s974_s16  ;;  %s32_s20 = sadd.s32 1, %s978_s17  ;;  %s982_s18 = sphi %s1019_s18, %s13_s18   ;;  %s978_s17 = sphi %s1017_s17, %s1170_s17   ;;  %s974_s16 = sphi %s1015_s16, %s1169_s16   ;;  %s970_s15 = sphi %s1013_s15, %s1168_s15   ;;  %s966_s14 = sphi %s1011_s14, %s1167_s14   ;;  %s962_s13 = sphi %s1009_s13, %s1166_s13   ;;  %s958_s12 = sphi %s1007_s12, %s1165_s12  }
   0x5   : > { %p26_p0 = scmp.ge.s32.totalorder %s25_s19, 2  ;;  %s763_s21 = sadd.s32 4294967295, %s982_s18  }
   0x6   : > { %p48_p1 = scmp.ne.s32.totalorder %s962_s13, %s958_s12  ;;  %p49_p2 = scmp.eq.s32.totalorder %s982_s18, 0 }
   0x7   : > { %s1172_s19 = smov (%p26_p0, %s25_s19), 0  ;;  %s1174_s20 = smov (!%p26_p0, %s32_s20), %s978_s17 }
   0x8   : > { %p34_p3 = scmp.ge.s32.totalorder %s1174_s20, 2  ;;  %p136_p4 = scmp.eq.s32.totalorder %s763_s21, 3 }
   0x9   : > { %s36_s22 = ssub.s32 %s974_s16, %s1172_s19  ;;  %p50_p5 = por %p49_p2, %p48_p1 }
   0xa   : > { %s1176_s20 = smov (%p34_p3, %s1174_s20), 0  ;;  %p1055_p6 = por %p136_p4, %p48_p1 }
   0xb   : > { %s37_s24 = ssub.s32 %s978_s17, %s1176_s20  ;;  %s41_s26 = sadd.s32 1, %s962_s13 }
   0xc   : > { %s38_s25 = sor.u32 %s37_s24, %s36_s22  ;;  %p766_p8 = scmp.ge.s32.totalorder %s982_s18, 4 }
   0xd   : > { %p39_p7 = scmp.eq.s32.totalorder %s38_s25, 0 }
   0xe   : > { %158 = sbr.rel (%p766_p8) target bundleno = 30 (0x1e), region = 16 }
   0xf   : > { %s1063_s27 = scalar_select %p39_p7, %s962_s13, %s41_s26  }
  0x13   : > { %161 = sbr.rel (!%p50_p5) target bundleno = 30 (0x1e), region = 20  ;;  %s163_s28 = sand.u32 (%p50_p5), 1, %s962_s13  }
  0x14   : > { %s166_s29 = smul.u32 (%p50_p5), 3, %s978_s17 }
  0x15   : > { %s842_s30 = smul.u32 (%p50_p5), 24, %s163_s28 }
  0x16   : > { %s843_s4 = smul.u32 (%p50_p5), 12, %s974_s16 }
  0x17   : > { %s165_s10 = scalar_lea.vmem (%p50_p5), [#allocation2], %s842_s30 }
  0x18   : > { %s168_s5 = sadd.s32 %s843_s4, %s166_s29 }
  0x19   : > { %s767_s6 = sshll.u32 %s168_s5, 2 }
  0x1a   : > { %s170_s9 = scalar_lea.vmem %s1160_s0, %s767_s6 }
  0x1b   : > { %v185_v0 = vld [vmem:[%s170_s9] sm:$0xff]  ;;  %v187_v1 = vld [vmem:[%s170_s9 + $0x18] sm:$0xff]  ;;  %v768_v2 = vld [vmem:[%s170_s9 + $0x8] sm:$0xf] }
  0x1c   : > { %186 = vst [vmem:[%s165_s10] sm:$0xff] %v185_v0  ;;  %188 = vst [vmem:[%s165_s10 + $0xc] sm:$0xff] %v187_v1  ;;  %v770_v3 = vld [vmem:[%s170_s9 + $0x20] sm:$0xf] }
  0x1d   : > { %769 = vst [vmem:[%s165_s10 + $0x8] sm:$0xf] %v768_v2  ;;  %771 = vst [vmem:[%s165_s10 + $0x14] sm:$0xf] %v770_v3 }
  0x1e PF: > { %p772_p9 = scmp.ge.s32.totalorder %s982_s18, 1  ;;  %p226_p10 = scmp.lt.s32.totalorder %s982_s18, 5 }
  0x20   : > { %p227_p11 = pnand %p772_p9, %p226_p10 }
  0x21   : > { %s233_s11 = sand.u32 (!%p227_p11), 1, %s958_s12   ;;  %s986_s24 = smov (!%p227_p11), 64  }
  0x22   : > { %230 = sbr.rel (%p227_p11) target bundleno = 1107 (0x453), region = 54  ;;  %s774_s25 = sshll.u32 (!%p227_p11), %s970_s15, 1 }
  0x23   : > { %s844_s21 = smul.u32 (!%p227_p11), 24, %s233_s11  ;;  %p281_p12 = scmp.lt.s32.totalorder (!%p227_p11), %s966_s14, 1 }
  0x24   : > { %p271_p13 = scmp.lt.s32.totalorder (!%p227_p11), %s774_s25, 3  ;;  %s773_s8 = sshll.u32 (!%p227_p11), %s233_s11, 3 }
  0x25   : > { %s1083_s22 = scalar_lea.vmem (!%p227_p11), [#allocation2], %s844_s21  ;;  %s267_s9 = scalar_lea.vmem (!%p227_p11), [#allocation3], %s773_s8 }
  0x27   : > { %v984_v4 = vmov 0.0   ;;  %vm985_vm0 = vmmov 0   ;;  %vm315_vm1 = vcmask 523264   ;;  %v909_v5 = vld [vmem:[%s1083_s22 + $0x4] ss:$12 sps:$4 sm:$0xff]   ;;  %s282_s26 = scalar_select %p281_p12, %s966_s14, 1  ;;  %v364_v8 = vlaneseq }
  0x28   : > { %818 = vmatprep.subr.bf16.mxu0 %v984_v4  ;;  %820 = vmatprep.mubr.msk.bf16.mxu0 %vm985_vm0, %v984_v4  ;;  %v320_v6 = vsel %vm315_vm1, %v909_v5, 0  ;;  %v910_v7 = vld [vmem:[%s1083_s22] ss:$12 sps:$4 sm:$0xff]   ;;  %s1178_s25 = smov (!%p271_p13, %s774_s25), 3  ;;  %vm371_vm2 = vcmask 130048   ;;  %s789_s12 = sshll.u32 (%p1055_p6), %s966_s14, 2 }
  0x29   : > { %824 = vmatprep.subr.bf16.mxu1 %v984_v4  ;;  %826 = vmatprep.mubr.msk.bf16.mxu1 %vm985_vm0, %v984_v4  ;;  %s283_s30 = scalar_lea.vmem %s1162_s2, %s282_s26  ;;  %s793_s4 = sshll.u32 %s1178_s25, 3  ;;  %v365_v11 = vshrl.u32 %v364_v8, 7  ;;  %v911_v28 = vld [vmem:[%s1083_s22 + $0x8] ss:$12 sps:$4 sm:$0xff]  }
  0x2a   : > { %819 = vmatpush3.bf16.xpose.msra.mxu0 %v320_v6  ;;  %452 = vrot.lane.b32.xlu1 %v909_v5, %s986_s24  ;;  %v287_v9 = vld [vmem:[%s283_s30] sm:$0x1]  ;;  %s1103_s7 = scalar_lea.vmem %s1161_s1, %s793_s4  ;;  %s604_s10 = sadd.s32 (%p1055_p6), %s970_s15, %s789_s12 }
  0x2b   : > { %836 = vmatprep.subr.bf16.mxu0 %v984_v4  ;;  %v288_v10 = vsub.f32 1.0, %v287_v9  ;;  %v797_v12 = vld [vmem:[%s1103_s7] sm:$0xff]   ;;  %v366_v14 = vsub.s32 0, %v365_v11  ;;  %825 = vmatpush3.bf16.msra.mxu1 %v911_v28  ;;  %v809_v43 = vld [vmem:[%s1103_s7 + $0x8] sm:$0xff]   ;;  %s790_s11 = sshll.u32 (%p1055_p6), %s604_s10, 2 }
  0x2c   : > { %v798_v15 = vunpack.c.l.bf16 %v797_v12  ;;  %v799_v19 = vunpack.c.h.bf16 %v797_v12  ;;  %830 = vmatprep.subr.bf16.mxu1 %v984_v4  ;;  %v802_v45 = vunpack.c.l.bf16 %v809_v43  ;;  %v803_v49 = vunpack.c.h.bf16 %v809_v43 }
  0x2d   : > { %v289_v13 = vmul.f32 -1e+09, %v288_v10 }
  0x2e   : > { %450 = vrot.lane.b32.xlu1 %v910_v7, %s986_s24 }
  0x2f   : > { %v367_v16 = vrot.slane %v289_v13, %v366_v14 }
  0x31   : > { %821 = vmatmul.mubr.msk.bf16.vlgmr.msra.gmra.mxu0 %vm315_vm1, %v910_v7 }
  0x32   : > { %838 = vmatprep.mubr.msk.bf16.mxu0 %vm985_vm0, %v984_v4 }
  0x9c   : > { %v453_v35 = vpop.permute.xlu1 %452 }
  0x9d   : > { %v458_v38 = vsel %vm315_vm1, %v453_v35, 0 }
  0xa0   : > { %v451_v40 = vpop.permute.xlu1 %450 }
  0xf1   : > { %v356_v17 = vpop.f32.mrf.mxu0 }
  0xf2   : > { %v357_v18 = vadd.f32 %v798_v15, %v356_v17 }
  0xf3   : > { %v822_v20 = vpop.f32.mrf.mxu0 }
  0xf4   : > { %v369_v21 = vadd.f32 %v367_v16, %v357_v18 }
  0xf5   : > { %v359_v22 = vpop.f32.mrf.mxu0 }
  0xf6   : > { %v360_v23 = vadd.f32 %v799_v19, %v359_v22  ;;  %v372_v24 = vsel %vm371_vm2, %v369_v21, -inf }
  0xf7   : > { %373 = vmax.xlane.f32.xlu0 %v372_v24  ;;  %v823_v25 = vpop.f32.mrf.mxu0 }
  0xf8   : > { %v370_v26 = vadd.f32 %v367_v16, %v360_v23 }
  0xfa   : > { %v375_v27 = vsel %vm371_vm2, %v370_v26, -inf }
  0xfb   : > { %376 = vmax.xlane.f32.xlu0 %v375_v27 }
 0x180   : > { %v374_v29 = vpop.xlane.xlu0 %373 }
 0x181   : > { %v378_v30 = vsub.f32 %v369_v21, %v374_v29 }
 0x183   : > { %v380_v31 = vmul.f32 1.442695, %v378_v30 }
 0x184   : > { %v377_v32 = vpop.xlane.xlu0 %376 }
 0x185   : > { %v379_v33 = vsub.f32 %v370_v26, %v377_v32  ;;  %912 = vpow2.f32 %v380_v31 }
 0x187   : > { %v382_v34 = vmul.f32 1.442695, %v379_v33 }
 0x189   : > { %914 = vpow2.f32 %v382_v34 }
 0x192   : > { %v913_v36 = vpop.eup %912 }
 0x193   : > { %v384_v6 = vsel %vm371_vm2, %v913_v36, 0.0 }
 0x196   : > { %v915_v37 = vpop.eup %914 }
 0x197   : > { %v390_v39 = vpack.c.bf16 %v915_v37, %v913_v36  ;;  %v387_v7 = vsel %vm371_vm2, %v915_v37, 0.0 }
 0x199   : > { %827 = vmatmul.mubr.msk.bf16.vlgmr.msra.gmra.mxu1 %vm371_vm2, %v390_v39 }
 0x19a   : > { %831 = vmatpush3.bf16.xpose.msra.mxu1 %v458_v38  ;;  %832 = vmatprep.mubr.msk.bf16.mxu1 %vm985_vm0, %v984_v4 }
 0x1a1   : > { %833 = vmatmul.mubr.msk.bf16.vlgmr.msra.gmra.mxu1 %vm315_vm1, %v451_v40 }
 0x259   : > { %v1115_v41 = vpop.f32.mrf.mxu1 }
 0x25b   : > { %v828_v42 = vpop.f32.mrf.mxu1 }
 0x25d   : > { %v437_v44 = vpop.f32.mrf.mxu1 }
 0x25f   : > { %v829_v46 = vpop.f32.mrf.mxu1 }
 0x261   : > { %v494_v47 = vpop.f32.mrf.mxu1 }
 0x262   : > { %v495_v48 = vadd.f32 %v802_v45, %v494_v47 }
 0x263   : > { %v834_v50 = vpop.f32.mrf.mxu1 }
 0x264   : > { %v501_v51 = vadd.f32 %v495_v48, %v367_v16 }
 0x265   : > { %v497_v52 = vpop.f32.mrf.mxu1 }
 0x266   : > { %v498_v53 = vadd.f32 %v803_v49, %v497_v52  ;;  %v503_v54 = vsel %vm371_vm2, %v501_v51, -inf }
 0x267   : > { %504 = vmax.xlane.f32.xlu0 %v503_v54  ;;  %v835_v55 = vpop.f32.mrf.mxu1 }
 0x268   : > { %v502_v56 = vadd.f32 %v498_v53, %v367_v16 }
 0x26a   : > { %v506_v57 = vsel %vm371_vm2, %v502_v56, -inf }
 0x26b   : > { %507 = vmax.xlane.f32.xlu1 %v506_v57 }
 0x27d   : > { %522 = vrot.lane.b32.xlu0 %v911_v28, %s986_s24 }
 0x2f0   : > { %v505_v58 = vpop.xlane.xlu0 %504 }
 0x2f1   : > { %v509_v59 = vsub.f32 %v501_v51, %v505_v58 }
 0x2f3   : > { %v511_v60 = vmul.f32 1.442695, %v509_v59 }
 0x2f4   : > { %v508_v61 = vpop.xlane.xlu1 %507  ;;  %v523_v62 = vpop.permute.xlu0 %522 }
 0x2f5   : > { %916 = vpow2.f32 %v511_v60  ;;  %v510_v63 = vsub.f32 %v502_v56, %v508_v61  ;;  %837 = vmatpush3.bf16.msra.mxu0 %v523_v62 }
 0x2f7   : > { %v513_v0 = vmul.f32 1.442695, %v510_v63 }
 0x2f9   : > { %918 = vpow2.f32 %v513_v0 }
 0x302   : > { %v917_v1 = vpop.eup %916 }
 0x303   : > { %v515_v2 = vsel %vm371_vm2, %v917_v1, 0.0 }
 0x304   : > { %516 = vadd.xlane.f32.xlu0 %v515_v2 }
 0x306   : > { %v919_v3 = vpop.eup %918 }
 0x307   : > { %v518_v4 = vsel %vm371_vm2, %v919_v3, 0.0  ;;  %v521_v5 = vpack.c.bf16 %v919_v3, %v917_v1 }
 0x308   : > { %519 = vadd.xlane.f32.xlu1 %v518_v4 }
 0x309   : > { %839 = vmatmul.mubr.msk.bf16.vlgmr.msra.gmra.mxu0 %vm371_vm2, %v521_v5 }
 0x30c   : > { %385 = vadd.xlane.f32.xlu1 %v384_v6 }
 0x310   : > { %388 = vadd.xlane.f32.xlu1 %v387_v7 }
 0x38d   : > { %v517_v8 = vpop.xlane.xlu0 %516 }
 0x38e   : > { %920 = vrcp.f32 %v517_v8 }
 0x391   : > { %v520_v9 = vpop.xlane.xlu1 %519 }
 0x392   : > { %922 = vrcp.f32 %v520_v9 }
 0x395   : > { %v386_v19 = vpop.xlane.xlu1 %385 }
 0x396   : > { %924 = vrcp.f32 %v386_v19 }
 0x399   : > { %v389_v20 = vpop.xlane.xlu1 %388 }
 0x39a   : > { %926 = vrcp.f32 %v389_v20 }
 0x39b   : > { %v921_v12 = vpop.eup %920 }
 0x39f   : > { %v923_v13 = vpop.eup %922 }
 0x3a3   : > { %v925_v21 = vpop.eup %924 }
 0x3a4   : > { %v443_v24 = vmul.f32 %v925_v21, %v1115_v41 }
 0x3a7   : > { %v927_v22 = vpop.eup %926 }
 0x3a8   : > { %v444_v25 = vmul.f32 %v927_v22, %v437_v44 }
 0x3c9   : > { %v562_v10 = vpop.f32.mrf.mxu0 }
 0x3ca   : > { %v571_v15 = vmul.f32 %v921_v12, %v562_v10 }
 0x3cb   : > { %v840_v11 = vpop.f32.mrf.mxu0 }
 0x3cd   : > { %v565_v14 = vpop.f32.mrf.mxu0 }
 0x3ce   : > { %v572_v16 = vmul.f32 %v923_v13, %v565_v14 }
 0x3cf   : > { %v841_v17 = vpop.f32.mrf.mxu0 }
 0x3d0   : > { %v904_v18 = vpack.i.bf16 %v572_v16, %v571_v15 }
 0x3d2   : > { %905 = vrot.lane.b32.xlu1 %v904_v18, %s986_s24  ;;  %s606_s24 = scalar_lea.vmem (%p1055_p6), %s1163_s3, %s790_s11 }
 0x444   : > { %v906_v23 = vpop.permute.xlu1 %905 }
 0x445   : > { %v908_v26 = vunpack.i.h.bf16 %v906_v23  ;;  %v907_v27 = vunpack.i.l.bf16 %v906_v23 }
 0x446   : > { %599 = sbr.rel (!%p1055_p6) target bundleno = 1107 (0x453), region = 62 }
 0x447   : > { %v582_v28 = vsel %vm315_vm1, %v444_v25, %v908_v26  ;;  %v581_v29 = vsel %vm315_vm1, %v443_v24, %v907_v27 }
 0x448   : > { %v807_v30 = vpack.c.bf16 %v582_v28, %v581_v29 }
 0x44a   : > { %808 = vst [vmem:[%s267_s9] sm:$0xff] %v807_v30  }
 0x451   : > { %v623_v31 = vld [vmem:[%s267_s9] sm:$0xf]  ;;  %v625_v32 = vld [vmem:[%s267_s9 + $0x4] sm:$0xf] }
 0x452   : > { %624 = vst [vmem:[%s606_s24] sm:$0xf] %v623_v31  ;;  %626 = vst [vmem:[%s606_s24 + $0x8] sm:$0xf] %v625_v32 }
 0x453 PF: > { %s13_s18 = sadd.s32 1, %s982_s18   ;;  %s1165_s12 = smov %s962_s13 }
 0x454   : > { %p10_p0 = scmp.ge.s32.totalorder %s13_s18, 6   ;;  %s1166_s13 = smov %s1063_s27 }
 0x455   : > { %s1167_s14 = smov %s974_s16  ;;  %s1168_s15 = smov %s978_s17 }
 0x456   : > { %s1169_s16 = smov %s1172_s19  ;;  %s1170_s17 = smov %s1176_s20 }
 0x457   :  { %12 = sbr.rel (!%p10_p0) target bundleno = 4 (0x4), region = 148 }

// kernel: t5_token_classifier_forward.13
= control target key start
LH: loop header
LB: loop body
LE: loop exit
PB: predicated region body
PF: predicated region fallthrough
CT: control target
= control target key end

     0   :  { %vm240_vm0 = vcmask 519168   ;;  %s450_s1 = inlined_call_operand.vmem [shape: bf16[256,64], index: 1, kind: input, shape index: {}]   ;;  %s451_s0 = inlined_call_operand.vmem [shape: bf16[32,256], index: 0, kind: input, shape index: {}]   ;;  %s452_s2 = inlined_call_operand.vmem [shape: bf16[32,64], index: 2, kind: input, shape index: {}]   ;;  %s453_s3 = inlined_call_operand.vmem [shape: bf16[32,64], index: 3, kind: output, shape index: {}]  }
   0x1   :  { %v330_v0 = vld [vmem:[%s450_s1 + $0x78] sm:$0xff]   ;;  %v332_v2 = vld [vmem:[%s450_s1 + $0x70] sm:$0xff]   ;;  %v334_v4 = vld [vmem:[%s450_s1 + $0x68] sm:$0xff]  }
   0x2   :  { %v331_v1 = vld [vmem:[%s450_s1 + $0x38] sm:$0xff]   ;;  %286 = vmatprep.subr.bf16.mxu0 %v330_v0  ;;  %314 = vmatprep.subr.bf16.mxu1 %v330_v0  ;;  %v333_v3 = vld [vmem:[%s450_s1 + $0x30] sm:$0xff]   ;;  %v335_v5 = vld [vmem:[%s450_s1 + $0x28] sm:$0xff]  }
   0x3   :  { %287 = vmatpush3.bf16.msra.mxu0 %v331_v1  ;;  %322 = vmatpush3.bf16.msra.mxu1 %v331_v1  ;;  %v336_v6 = vld [vmem:[%s450_s1 + $0x60] sm:$0xff]   ;;  %v338_v8 = vld [vmem:[%s450_s1 + $0x58] sm:$0xff]   ;;  %v340_v10 = vld [vmem:[%s450_s1 + $0x50] sm:$0xff]  }
   0x4   :  { %288 = vmatprep.subr.bf16.mxu0 %v332_v2  ;;  %315 = vmatprep.subr.bf16.mxu1 %v332_v2  ;;  %v337_v7 = vld [vmem:[%s450_s1 + $0x20] sm:$0xff]   ;;  %v339_v9 = vld [vmem:[%s450_s1 + $0x18] sm:$0xff]   ;;  %v341_v13 = vld [vmem:[%s450_s1 + $0x10] sm:$0xff]  }
   0x5   :  { %v348_v11 = vld [vmem:[%s451_s0 + $0x4] ss:$8 sps:$4 sm:$0xff]   ;;  %v351_v12 = vld [vmem:[%s451_s0 + $0x14] ss:$8 sps:$4 sm:$0xff]   ;;  %v346_v18 = vld [vmem:[%s451_s0] ss:$8 sps:$4 sm:$0xff]  }
   0x6   :  { %v342_v14 = vld [vmem:[%s450_s1 + $0x48] sm:$0xff]   ;;  %207 = vmatprep.mubr.bf16.mxu0 %v348_v11  ;;  %215 = vmatprep.mubr.bf16.mxu1 %v351_v12  ;;  %v344_v16 = vld [vmem:[%s450_s1 + $0x40] sm:$0xff]   ;;  %v349_v19 = vld [vmem:[%s451_s0 + $0x10] ss:$8 sps:$4 sm:$0xff]  }
   0x7   :  { %289 = vmatpush3.bf16.msra.mxu0 %v333_v3  ;;  %323 = vmatpush3.bf16.msra.mxu1 %v333_v3  ;;  %v343_v15 = vld [vmem:[%s450_s1 + $0x8] sm:$0xff]   ;;  %v345_v17 = vld [vmem:[%s450_s1] sm:$0xff]  }
   0x8   :  { %290 = vmatprep.subr.bf16.mxu0 %v334_v4  ;;  %316 = vmatprep.subr.bf16.mxu1 %v334_v4  ;;  %v278_v20 = vld [vmem:[%s452_s2] sm:$0xff]   ;;  %v285_v21 = vld [vmem:[%s452_s2 + $0x8] sm:$0xff]  }
   0x9   :  { %v279_v24 = vunpack.c.l.bf16 %v278_v20  ;;  %v283_v25 = vunpack.c.l.bf16 %v285_v21  ;;  %v280_v34 = vunpack.c.h.bf16 %v278_v20  ;;  %v284_v35 = vunpack.c.h.bf16 %v285_v21 }
   0xb   :  { %291 = vmatpush3.bf16.msra.mxu0 %v335_v5  ;;  %324 = vmatpush3.bf16.msra.mxu1 %v335_v5 }
   0xc   :  { %292 = vmatprep.subr.bf16.mxu0 %v336_v6  ;;  %317 = vmatprep.subr.bf16.mxu1 %v336_v6 }
   0xf   :  { %293 = vmatpush3.bf16.msra.mxu0 %v337_v7  ;;  %325 = vmatpush3.bf16.msra.mxu1 %v337_v7 }
  0x10   :  { %294 = vmatprep.subr.bf16.mxu0 %v338_v8  ;;  %318 = vmatprep.subr.bf16.mxu1 %v338_v8 }
  0x13   :  { %295 = vmatpush3.bf16.msra.mxu0 %v339_v9  ;;  %326 = vmatpush3.bf16.msra.mxu1 %v339_v9 }
  0x14   :  { %296 = vmatprep.subr.bf16.mxu0 %v340_v10  ;;  %319 = vmatprep.subr.bf16.mxu1 %v340_v10 }
  0x17   :  { %297 = vmatpush3.bf16.msra.mxu0 %v341_v13  ;;  %327 = vmatpush3.bf16.msra.mxu1 %v341_v13 }
  0x18   :  { %298 = vmatprep.subr.bf16.mxu0 %v342_v14  ;;  %320 = vmatprep.subr.bf16.mxu1 %v342_v14 }
  0x1b   :  { %299 = vmatpush3.bf16.msra.mxu0 %v343_v15  ;;  %328 = vmatpush3.bf16.msra.mxu1 %v343_v15 }
  0x1c   :  { %300 = vmatprep.subr.bf16.mxu0 %v344_v16  ;;  %321 = vmatprep.subr.bf16.mxu1 %v344_v16 }
  0x1f   :  { %301 = vmatpush3.bf16.msra.mxu0 %v345_v17  ;;  %329 = vmatpush3.bf16.msra.mxu1 %v345_v17 }
  0x22   :  { %208 = vmatmul.mubr.bf16.vlgmr.msra.gmra.mxu0 %v346_v18  ;;  %216 = vmatmul.mubr.bf16.vlgmr.msra.gmra.mxu1 %v349_v19 }
  0xe2   :  { %v302_v22 = vpop.f32.mrf.mxu0  ;;  %v308_v23 = vpop.f32.mrf.mxu1 }
  0xe4   :  { %v303_v26 = vpop.f32.mrf.mxu0  ;;  %v309_v27 = vpop.f32.mrf.mxu1 }
  0xe5   :  { %v304_v28 = vadd.f32 %v303_v26, %v302_v22  ;;  %v310_v29 = vadd.f32 %v309_v27, %v308_v23 }
  0xe6   :  { %v305_v30 = vpop.f32.mrf.mxu0  ;;  %v311_v31 = vpop.f32.mrf.mxu1 }
  0xe7   :  { %v210_v32 = vadd.f32 %v304_v28, %v279_v24  ;;  %v218_v33 = vadd.f32 %v310_v29, %v283_v25 }
  0xe8   :  { %v306_v36 = vpop.f32.mrf.mxu0  ;;  %v312_v37 = vpop.f32.mrf.mxu1 }
  0xe9   :  { %v273_v38 = vpack.c.bf16 %v210_v32, %v210_v32  ;;  %v275_v39 = vpack.c.bf16 %v218_v33, %v218_v33  ;;  %v307_v40 = vadd.f32 %v306_v36, %v305_v30  ;;  %v313_v41 = vadd.f32 %v312_v37, %v311_v31 }
  0xeb   :  { %241 = vst.msk [vmem:[%s453_s3] sm:$0xf] %vm240_vm0, %v273_v38  ;;  %243 = vst.msk [vmem:[%s453_s3 + $0x8] sm:$0xf] %vm240_vm0, %v275_v39  ;;  %v213_v42 = vadd.f32 %v307_v40, %v280_v34  ;;  %v221_v43 = vadd.f32 %v313_v41, %v284_v35 }
  0xed   :  { %v274_v44 = vpack.c.bf16 %v213_v42, %v213_v42  ;;  %v276_v45 = vpack.c.bf16 %v221_v43, %v221_v43 }
  0xef   :  { %242 = vst.msk [vmem:[%s453_s3 + $0x4] sm:$0xf] %vm240_vm0, %v274_v44  ;;  %244 = vst.msk [vmem:[%s453_s3 + $0xc] sm:$0xf] %vm240_vm0, %v276_v45 }

// kernel: t5_token_classifier_forward.11
= control target key start
LH: loop header
LB: loop body
LE: loop exit
PB: predicated region body
PF: predicated region fallthrough
CT: control target
= control target key end

     0   :  { %s827_s12 = smov 0   ;;  %s829_s13 = smov 0   ;;  %s929_s0 = inlined_call_operand.vmem [shape: bf16[32,64], index: 0, kind: input, shape index: {}]   ;;  %s930_s1 = inlined_call_operand.vmem [shape: f32[1,64], index: 1, kind: input, shape index: {}]   ;;  %s931_s2 = inlined_call_operand.vmem [shape: bf16[64,768], index: 2, kind: input, shape index: {}]   ;;  %s932_s3 = inlined_call_operand.vmem [shape: bf16[32,768], index: 3, kind: output, shape index: {}]  }
   0x1   :  { %s831_s14 = smov 0   ;;  %s833_s15 = smov 0  }
   0x2   :  { %s835_s16 = smov 0  }
   0x3 LB: > { %s22_s17 = sadd.s32 1, %s800_s15  ;;  %s638_s18 = sadd.s32 4294967295, %s804_s16   ;;  %s804_s16 = sphi %s835_s16, %s13_s16   ;;  %s800_s15 = sphi %s833_s15, %s937_s15   ;;  %s796_s14 = sphi %s831_s14, %s936_s14   ;;  %s792_s13 = sphi %s829_s13, %s935_s13   ;;  %s788_s12 = sphi %s827_s12, %s934_s12  }
   0x4   : > { %p23_p0 = scmp.ge.s32.totalorder %s22_s17, 3  ;;  %p86_p1 = scmp.ne.s32.totalorder %s792_s13, %s788_s12 }
   0x5   : > { %p87_p2 = scmp.eq.s32.totalorder %s804_s16, 0  ;;  %p118_p4 = scmp.eq.s32.totalorder %s638_s18, 2 }
   0x6   : > { %s939_s17 = smov (%p23_p0, %s22_s17), 0  ;;  %s79_s20 = sadd.s32 1, %s792_s13 }
   0x7   : > { %p88_p3 = por %p87_p2, %p86_p1  ;;  %s76_s19 = ssub.s32 %s800_s15, %s939_s17 }
   0x8   : > { %p77_p5 = scmp.eq.s32.totalorder %s76_s19, 0  ;;  %p862_p6 = por %p118_p4, %p86_p1 }
   0x9   : > { %p642_p7 = scmp.ge.s32.totalorder %s804_s16, 3 }
   0xa   : > { %s867_s22 = scalar_select %p77_p5, %s792_s13, %s79_s20  }
   0xb   : > { %152 = sbr.rel (%p642_p7) target bundleno = 24 (0x18), region = 24 }
  0x10   : > { %155 = sbr.rel (!%p88_p3) target bundleno = 24 (0x18), region = 28  ;;  %s157_s23 = sand.u32 (%p88_p3), 1, %s792_s13  }
  0x11   : > { %s676_s24 = sshll.u32 (%p88_p3), %s800_s15, 3  ;;  %s643_s25 = sshll.u32 (%p88_p3), %s157_s23, 6 }
  0x12   : > { %s162_s28 = scalar_lea.vmem (%p88_p3), %s931_s2, %s676_s24  ;;  %s159_s29 = scalar_lea.vmem (%p88_p3), [#allocation3], %s643_s25 }
  0x13   : > { %v205_v0 = vld [vmem:[%s162_s28] sm:$0xff] (%p88_p3)  ;;  %v207_v1 = vld [vmem:[%s162_s28 + $0x18] sm:$0xff] (%p88_p3)  ;;  %v209_v2 = vld [vmem:[%s162_s28 + $0x30] sm:$0xff] (%p88_p3) }
  0x14   : > { %206 = vst [vmem:[%s159_s29] sm:$0xff] (%p88_p3), %v205_v0  ;;  %208 = vst [vmem:[%s159_s29 + $0x8] sm:$0xff] (%p88_p3), %v207_v1  ;;  %v211_v3 = vld [vmem:[%s162_s28 + $0x48] sm:$0xff] (%p88_p3)  ;;  %v213_v4 = vld [vmem:[%s162_s28 + $0x60] sm:$0xff] (%p88_p3) }
  0x15   : > { %210 = vst [vmem:[%s159_s29 + $0x10] sm:$0xff] %v209_v2  ;;  %v215_v5 = vld [vmem:[%s162_s28 + $0x78] sm:$0xff]  ;;  %212 = vst [vmem:[%s159_s29 + $0x18] sm:$0xff] %v211_v3  ;;  %v217_v6 = vld [vmem:[%s162_s28 + $0x90] sm:$0xff] }
  0x16   : > { %214 = vst [vmem:[%s159_s29 + $0x20] sm:$0xff] %v213_v4  ;;  %216 = vst [vmem:[%s159_s29 + $0x28] sm:$0xff] %v215_v5  ;;  %v219_v7 = vld [vmem:[%s162_s28 + $0xa8] sm:$0xff] }
  0x17   : > { %218 = vst [vmem:[%s159_s29 + $0x30] sm:$0xff] %v217_v6  ;;  %220 = vst [vmem:[%s159_s29 + $0x38] sm:$0xff] %v219_v7 }
  0x18 PF: > { %p646_p8 = scmp.ge.s32.totalorder %s804_s16, 1  ;;  %p225_p9 = scmp.lt.s32.totalorder %s804_s16, 4 }
  0x1a   : > { %p226_p10 = pnand %p646_p8, %p225_p9 }
  0x1b   : > { %s232_s30 = sand.u32 (!%p226_p10), 1, %s788_s12   ;;  %p649_p11 = scmp.ne.s32.totalorder (!%p226_p10), %s796_s14, 0 }
  0x1c   : > { %229 = sbr.rel (%p226_p10) target bundleno = 440 (0x1b8), region = 66  ;;  %s647_s4 = sshll.u32 (!%p226_p10), %s232_s30, 6 }
  0x1d   : > { %s648_s5 = sshll.u32 (!%p226_p10), %s232_s30, 5  ;;  %s878_s6 = scalar_lea.vmem (!%p226_p10), [#allocation3], %s647_s4 }
  0x1e   : > { %s880_s7 = scalar_lea.vmem (!%p226_p10), [#allocation4], %s648_s5 }
  0x21   : > { %272 = sbr.rel (%p649_p11) target bundleno = 212 (0xd4), region = 74 }
  0x26   : > { %v694_v8 = vld [vmem:[%s929_s0 + $0x8] sm:$0xff]   ;;  %v687_v9 = vld [vmem:[%s929_s0] sm:$0xff]   ;;  %vm285_vm0 = vcmask 523264   ;;  %vm342_vm1 = vcmask 519168  }
  0x27   : > { %v692_v10 = vunpack.c.l.bf16 %v694_v8  ;;  %v688_v11 = vunpack.c.l.bf16 %v687_v9  ;;  %v693_v12 = vunpack.c.h.bf16 %v694_v8  ;;  %v689_v13 = vunpack.c.h.bf16 %v687_v9  ;;  %v650_v35 = vld [vmem:[%s930_s1] ss:$0 sm:$0xff] }
  0x29   : > { %v283_v14 = vmul.f32 %v692_v10, %v692_v10  ;;  %v281_v15 = vmul.f32 %v688_v11, %v688_v11  ;;  %v284_v16 = vmul.f32 %v693_v12, %v693_v12  ;;  %v282_v17 = vmul.f32 %v689_v13, %v689_v13 }
  0x2b   : > { %v292_v18 = vsel %vm285_vm0, %v283_v14, 0.0  ;;  %v286_v19 = vsel %vm285_vm0, %v281_v15, 0.0  ;;  %v295_v20 = vsel %vm285_vm0, %v284_v16, 0.0  ;;  %v289_v21 = vsel %vm285_vm0, %v282_v17, 0.0 }
  0x2c   : > { %293 = vadd.xlane.f32.xlu1 %v292_v18  ;;  %287 = vadd.xlane.f32.xlu0 %v286_v19 }
  0x30   : > { %296 = vadd.xlane.f32.xlu1 %v295_v20  ;;  %290 = vadd.xlane.f32.xlu0 %v289_v21 }
  0xb5   : > { %v294_v22 = vpop.xlane.xlu1 %293  ;;  %v288_v23 = vpop.xlane.xlu0 %287 }
  0xb6   : > { %v301_v24 = vmul.f32 0.015625, %v294_v22  ;;  %v299_v25 = vmul.f32 0.015625, %v288_v23 }
  0xb8   : > { %v305_v26 = vadd.f32 1e-06, %v301_v24  ;;  %v303_v27 = vadd.f32 1e-06, %v299_v25 }
  0xb9   : > { %v297_v28 = vpop.xlane.xlu1 %296  ;;  %v291_v29 = vpop.xlane.xlu0 %290 }
  0xba   : > { %744 = vrsqrt.f32 %v305_v26  ;;  %v302_v30 = vmul.f32 0.015625, %v297_v28  ;;  %v300_v31 = vmul.f32 0.015625, %v291_v29 }
  0xbb   : > { %746 = vrsqrt.f32 %v303_v27 }
  0xbc   : > { %v306_v32 = vadd.f32 1e-06, %v302_v30  ;;  %v304_v33 = vadd.f32 1e-06, %v300_v31 }
  0xbe   : > { %748 = vrsqrt.f32 %v306_v32 }
  0xbf   : > { %750 = vrsqrt.f32 %v304_v33 }
  0xc7   : > { %v745_v34 = vpop.eup %744 }
  0xc8   : > { %v747_v36 = vpop.eup %746  ;;  %v313_v37 = vmul.f32 %v745_v34, %v692_v10 }
  0xc9   : > { %v311_v38 = vmul.f32 %v747_v36, %v688_v11 }
  0xca   : > { %v324_v39 = vmul.f32 %v650_v35, %v313_v37 }
  0xcb   : > { %v749_v40 = vpop.eup %748  ;;  %v322_v41 = vmul.f32 %v650_v35, %v311_v38 }
  0xcc   : > { %v751_v42 = vpop.eup %750  ;;  %v679_v43 = vpack.c.bf16 %v324_v39, %v324_v39  ;;  %v314_v44 = vmul.f32 %v749_v40, %v693_v12 }
  0xcd   : > { %v677_v45 = vpack.c.bf16 %v322_v41, %v322_v41  ;;  %v312_v46 = vmul.f32 %v751_v42, %v689_v13 }
  0xce   : > { %345 = vst.msk [vmem:[#allocation2 + $0x8] sm:$0xf] %vm342_vm1, %v679_v43  ;;  %v325_v47 = vmul.f32 %v650_v35, %v314_v44 }
  0xcf   : > { %343 = vst.msk [vmem:[#allocation2] sm:$0xf] %vm342_vm1, %v677_v45  ;;  %v323_v48 = vmul.f32 %v650_v35, %v312_v46 }
  0xd0   : > { %v680_v49 = vpack.c.bf16 %v325_v47, %v325_v47 }
  0xd1   : > { %v678_v50 = vpack.c.bf16 %v323_v48, %v323_v48 }
  0xd2   : > { %346 = vst.msk [vmem:[#allocation2 + $0xc] sm:$0xf] %vm342_vm1, %v680_v49 }
  0xd3   : > { %344 = vst.msk [vmem:[#allocation2 + $0x4] sm:$0xf] %vm342_vm1, %v678_v50 }
  0xd4 PF: > { %v752_v51 = vld [vmem:[%s878_s6 + $0x34] ss:$8 sps:$4 sm:$0xff]   ;;  %v754_v52 = vld [vmem:[%s878_s6 + $0x30] ss:$8 sps:$4 sm:$0xff]   ;;  %v806_v53 = vmov 0   ;;  %vm409_vm2 = vcmask 523264  }
  0xd5   : > { %448 = vmatprep.mubr.bf16.mxu0 %v806_v53  ;;  %458 = vmatprep.mubr.bf16.mxu1 %v806_v53  ;;  %v755_v54 = vld [vmem:[%s878_s6 + $0x24] ss:$8 sps:$4 sm:$0xff]   ;;  %v757_v55 = vld [vmem:[%s878_s6 + $0x20] ss:$8 sps:$4 sm:$0xff]   ;;  %v758_v56 = vld [vmem:[%s878_s6 + $0x14] ss:$8 sps:$4 sm:$0xff]  }
  0xd6   : > { %424 = vmatprep.subr.bf16.mxu0 %v752_v51  ;;  %695 = vmatprep.subr.bf16.mxu1 %v752_v51  ;;  %v760_v57 = vld [vmem:[%s878_s6 + $0x10] ss:$8 sps:$4 sm:$0xff]   ;;  %v761_v58 = vld [vmem:[%s878_s6 + $0x4] ss:$8 sps:$4 sm:$0xff]   ;;  %v763_v59 = vld [vmem:[%s878_s6] ss:$8 sps:$4 sm:$0xff]  }
  0xd7   : > { %425 = vmatpush1.bf16.msra.mxu0 %v754_v52  ;;  %699 = vmatpush1.bf16.msra.mxu1 %v754_v52  ;;  %s685_s19 = sshll.u32 (%p862_p6), %s796_s14, 3 }
  0xd8   : > { %426 = vmatprep.subr.bf16.mxu0 %v755_v54  ;;  %696 = vmatprep.subr.bf16.mxu1 %v755_v54  ;;  %s509_s24 = scalar_lea.vmem (%p862_p6), %s932_s3, %s685_s19 }
  0xd9   : > { %v765_v61 = vld [vmem:[#allocation2 + $0x8] sm:$0xff]  }
  0xda   : > { %v764_v60 = vld [vmem:[#allocation2] sm:$0xff]  }
  0xdb   : > { %427 = vmatpush1.bf16.msra.mxu0 %v757_v55  ;;  %700 = vmatpush1.bf16.msra.mxu1 %v757_v55 }
  0xdc   : > { %428 = vmatprep.subr.bf16.mxu0 %v758_v56  ;;  %697 = vmatprep.subr.bf16.mxu1 %v758_v56 }
  0xdf   : > { %429 = vmatpush1.bf16.msra.mxu0 %v760_v57  ;;  %701 = vmatpush1.bf16.msra.mxu1 %v760_v57 }
  0xe0   : > { %430 = vmatprep.subr.bf16.mxu0 %v761_v58  ;;  %698 = vmatprep.subr.bf16.mxu1 %v761_v58 }
  0xe3   : > { %431 = vmatpush1.bf16.msra.mxu0 %v763_v59  ;;  %702 = vmatpush1.bf16.msra.mxu1 %v763_v59 }
  0xe6   : > { %665 = vmatmul.mubr.msk.bf16.vlgmr.msra.gmra.mxu0 %vm409_vm2, %v764_v60  ;;  %666 = vmatmul.mubr.msk.bf16.vlgmr.msra.gmra.mxu1 %vm409_vm2, %v765_v61 }
 0x1a6   : > { %v450_v62 = vpop.f32.mrf.mxu0  ;;  %v460_v63 = vpop.f32.mrf.mxu1 }
 0x1a8   : > { %v452_v0 = vpop.f32.mrf.mxu0  ;;  %v462_v1 = vpop.f32.mrf.mxu1 }
 0x1a9   : > { %v681_v2 = vpack.c.bf16 %v452_v0, %v450_v62  ;;  %v683_v3 = vpack.c.bf16 %v462_v1, %v460_v63 }
 0x1aa   : > { %v454_v4 = vpop.f32.mrf.mxu0  ;;  %v464_v5 = vpop.f32.mrf.mxu1 }
 0x1ab   : > { %493 = vst [vmem:[%s880_s7] sm:$0xff] %v681_v2  ;;  %495 = vst [vmem:[%s880_s7 + $0x10] sm:$0xff] %v683_v3  ;;  %503 = sbr.rel (!%p862_p6) target bundleno = 440 (0x1b8), region = 78 }
 0x1ac   : > { %v456_v6 = vpop.f32.mrf.mxu0  ;;  %v466_v7 = vpop.f32.mrf.mxu1 }
 0x1ad   : > { %v682_v8 = vpack.c.bf16 %v456_v6, %v454_v4  ;;  %v684_v9 = vpack.c.bf16 %v466_v7, %v464_v5 }
 0x1af   : > { %494 = vst [vmem:[%s880_s7 + $0x8] sm:$0xff] %v682_v8  ;;  %496 = vst [vmem:[%s880_s7 + $0x18] sm:$0xff] %v684_v9 }
 0x1b2   : > { %v544_v10 = vld [vmem:[%s880_s7] sm:$0xff]  ;;  %v548_v12 = vld [vmem:[%s880_s7 + $0x10] sm:$0xff] }
 0x1b3   : > { %545 = vst [vmem:[%s509_s24] sm:$0xff] %v544_v10  ;;  %549 = vst [vmem:[%s509_s24 + $0x30] sm:$0xff] %v548_v12 }
 0x1b6   : > { %v546_v11 = vld [vmem:[%s880_s7 + $0x8] sm:$0xff]  ;;  %v550_v13 = vld [vmem:[%s880_s7 + $0x18] sm:$0xff] }
 0x1b7   : > { %547 = vst [vmem:[%s509_s24 + $0x18] sm:$0xff] %v546_v11  ;;  %551 = vst [vmem:[%s509_s24 + $0x48] sm:$0xff] %v550_v13 }
 0x1b8 PF: > { %s13_s16 = sadd.s32 1, %s804_s16   ;;  %s934_s12 = smov %s792_s13 }
 0x1b9   : > { %p10_p12 = scmp.ge.s32.totalorder %s13_s16, 5   ;;  %s935_s13 = smov %s867_s22 }
 0x1ba   : > { %s936_s14 = smov %s800_s15  ;;  %s937_s15 = smov %s939_s17 }
 0x1bb   :  { %12 = sbr.rel (!%p10_p12) target bundleno = 3 (0x3), region = 150 }

// kernel: t5_token_classifier_forward.14
= control target key start
LH: loop header
LB: loop body
LE: loop exit
PB: predicated region body
PF: predicated region fallthrough
CT: control target
= control target key end

     0   :  { %vm31_vm0 = vcmask 523264   ;;  %vm88_vm1 = vcmask 519168   ;;  %s353_s0 = inlined_call_operand.vmem [shape: bf16[32,64], index: 0, kind: input, shape index: {}]   ;;  %s354_s2 = inlined_call_operand.vmem [shape: bf16[64,128], index: 2, kind: input, shape index: {}]   ;;  %s355_s1 = inlined_call_operand.vmem [shape: f32[1,64], index: 1, kind: input, shape index: {}]   ;;  %s356_s3 = inlined_call_operand.vmem [shape: bf16[32,128], index: 3, kind: output, shape index: {}]  }
   0x1   :  { %v266_v0 = vld [vmem:[%s353_s0 + $0x8] sm:$0xff]   ;;  %v249_v1 = vld [vmem:[%s353_s0] sm:$0xff]   ;;  %v286_v14 = vld [vmem:[%s354_s2 + $0x18] sm:$0xff]  }
   0x2   :  { %v254_v2 = vunpack.c.l.bf16 %v266_v0  ;;  %v250_v3 = vunpack.c.l.bf16 %v249_v1  ;;  %v255_v4 = vunpack.c.h.bf16 %v266_v0  ;;  %v251_v5 = vunpack.c.h.bf16 %v249_v1  ;;  %274 = vmatprep.subr.bf16.mxu0 %v286_v14  ;;  %v287_v15 = vld [vmem:[%s354_s2 + $0x10] sm:$0xff]   ;;  %v288_v16 = vld [vmem:[%s354_s2 + $0x8] sm:$0xff]   ;;  %v289_v17 = vld [vmem:[%s354_s2] sm:$0xff]  }
   0x3   :  { %275 = vmatpush3.bf16.msra.mxu0 %v286_v14  ;;  %v223_v31 = vld [vmem:[%s355_s1] ss:$0 sm:$0xff] }
   0x4   :  { %v29_v6 = vmul.f32 %v254_v2, %v254_v2  ;;  %v27_v7 = vmul.f32 %v250_v3, %v250_v3  ;;  %v30_v8 = vmul.f32 %v255_v4, %v255_v4  ;;  %v28_v9 = vmul.f32 %v251_v5, %v251_v5  ;;  %276 = vmatprep.subr.bf16.mxu0 %v287_v15 }
   0x6   :  { %v38_v10 = vsel %vm31_vm0, %v29_v6, 0.0  ;;  %v32_v11 = vsel %vm31_vm0, %v27_v7, 0.0  ;;  %v41_v12 = vsel %vm31_vm0, %v30_v8, 0.0  ;;  %v35_v13 = vsel %vm31_vm0, %v28_v9, 0.0 }
   0x7   :  { %39 = vadd.xlane.f32.xlu1 %v38_v10  ;;  %33 = vadd.xlane.f32.xlu0 %v32_v11 }
   0x8   :  { %277 = vmatpush3.bf16.msra.mxu0 %v287_v15 }
   0x9   :  { %278 = vmatprep.subr.bf16.mxu0 %v288_v16 }
   0xb   :  { %42 = vadd.xlane.f32.xlu1 %v41_v12  ;;  %36 = vadd.xlane.f32.xlu0 %v35_v13 }
   0xc   :  { %279 = vmatpush3.bf16.msra.mxu0 %v288_v16 }
   0xd   :  { %280 = vmatprep.subr.bf16.mxu0 %v289_v17 }
  0x10   :  { %281 = vmatpush3.bf16.msra.mxu0 %v289_v17 }
  0x90   :  { %v40_v18 = vpop.xlane.xlu1 %39  ;;  %v34_v19 = vpop.xlane.xlu0 %33 }
  0x91   :  { %v47_v20 = vmul.f32 0.015625, %v40_v18  ;;  %v45_v21 = vmul.f32 0.015625, %v34_v19 }
  0x93   :  { %v51_v22 = vadd.f32 1e-06, %v47_v20  ;;  %v49_v23 = vadd.f32 1e-06, %v45_v21 }
  0x94   :  { %v43_v24 = vpop.xlane.xlu1 %42  ;;  %v37_v25 = vpop.xlane.xlu0 %36 }
  0x95   :  { %292 = vrsqrt.f32 %v51_v22  ;;  %v48_v26 = vmul.f32 0.015625, %v43_v24  ;;  %v46_v27 = vmul.f32 0.015625, %v37_v25 }
  0x96   :  { %294 = vrsqrt.f32 %v49_v23 }
  0x97   :  { %v52_v28 = vadd.f32 1e-06, %v48_v26  ;;  %v50_v29 = vadd.f32 1e-06, %v46_v27 }
  0x99   :  { %296 = vrsqrt.f32 %v52_v28 }
  0x9a   :  { %298 = vrsqrt.f32 %v50_v29 }
  0xa2   :  { %v293_v30 = vpop.eup %292 }
  0xa3   :  { %v295_v32 = vpop.eup %294  ;;  %v59_v33 = vmul.f32 %v293_v30, %v254_v2 }
  0xa4   :  { %v57_v34 = vmul.f32 %v295_v32, %v250_v3 }
  0xa5   :  { %v70_v35 = vmul.f32 %v223_v31, %v59_v33 }
  0xa6   :  { %v297_v36 = vpop.eup %296  ;;  %v68_v37 = vmul.f32 %v223_v31, %v57_v34 }
  0xa7   :  { %v299_v38 = vpop.eup %298  ;;  %v242_v39 = vpack.c.bf16 %v70_v35, %v70_v35  ;;  %v60_v40 = vmul.f32 %v297_v36, %v255_v4 }
  0xa8   :  { %v240_v41 = vpack.c.bf16 %v68_v37, %v68_v37  ;;  %v58_v42 = vmul.f32 %v299_v38, %v251_v5 }
  0xa9   :  { %91 = vst.msk [vmem:[#allocation2 + $0x8] sm:$0xf] %vm88_vm1, %v242_v39  ;;  %v71_v43 = vmul.f32 %v223_v31, %v60_v40 }
  0xaa   :  { %89 = vst.msk [vmem:[#allocation2] sm:$0xf] %vm88_vm1, %v240_v41  ;;  %v69_v44 = vmul.f32 %v223_v31, %v58_v42 }
  0xab   :  { %v243_v45 = vpack.c.bf16 %v71_v43, %v71_v43 }
  0xac   :  { %v241_v46 = vpack.c.bf16 %v69_v44, %v69_v44 }
  0xad   :  { %92 = vst.msk [vmem:[#allocation2 + $0xc] sm:$0xf] %vm88_vm1, %v243_v45 }
  0xae   :  { %90 = vst.msk [vmem:[#allocation2 + $0x4] sm:$0xf] %vm88_vm1, %v241_v46 }
  0xb4   :  { %v291_v47 = vld [vmem:[#allocation2 + $0x8] sm:$0xff]  }
  0xb5   :  { %v290_v48 = vld [vmem:[#allocation2] sm:$0xff]  }
  0xb6   :  { %282 = vmatprep.mubr.msk.bf16.mxu0 %vm31_vm0, %v290_v48 }
  0xb7   :  { %283 = vmatmul.mubr.msk.bf16.vlgmr.msra.gmra.mxu0 %vm31_vm0, %v291_v47 }
 0x177   :  { %v284_v49 = vpop.f32.mrf.mxu0 }
 0x178   :  { %v197_v52 = vmax.f32 %v284_v49, 0.0 }
 0x179   :  { %v180_v50 = vpop.f32.mrf.mxu0 }
 0x17a   :  { %v195_v55 = vmax.f32 %v180_v50, 0.0 }
 0x17b   :  { %v285_v51 = vpop.f32.mrf.mxu0 }
 0x17c   :  { %v198_v53 = vmax.f32 %v285_v51, 0.0 }
 0x17d   :  { %v183_v54 = vpop.f32.mrf.mxu0 }
 0x17e   :  { %v264_v56 = vpack.c.bf16 %v198_v53, %v197_v52  ;;  %v196_v57 = vmax.f32 %v183_v54, 0.0 }
 0x180   :  { %267 = vst [vmem:[%s356_s3 + $0x8] sm:$0xff] %v264_v56   ;;  %v259_v58 = vpack.c.bf16 %v196_v57, %v195_v55 }
 0x182   :  { %260 = vst [vmem:[%s356_s3] sm:$0xff] %v259_v58  }

// kernel: t5_token_classifier_forward.15
= control target key start
LH: loop header
LB: loop body
LE: loop exit
PB: predicated region body
PF: predicated region fallthrough
CT: control target
= control target key end

     0   :  { %vm168_vm0 = vcmask 519168   ;;  %s312_s1 = inlined_call_operand.vmem [shape: bf16[128,64], index: 1, kind: input, shape index: {}]   ;;  %s313_s0 = inlined_call_operand.vmem [shape: bf16[32,128], index: 0, kind: input, shape index: {}]   ;;  %s314_s2 = inlined_call_operand.vmem [shape: bf16[32,64], index: 2, kind: input, shape index: {}]   ;;  %s315_s3 = inlined_call_operand.vmem [shape: bf16[32,64], index: 3, kind: output, shape index: {}]  }
   0x1   :  { %v234_v0 = vld [vmem:[%s312_s1 + $0x38] sm:$0xff]   ;;  %v235_v1 = vld [vmem:[%s312_s1 + $0x30] sm:$0xff]   ;;  %v236_v2 = vld [vmem:[%s312_s1 + $0x28] sm:$0xff]  }
   0x2   :  { %214 = vmatprep.subr.bf16.mxu0 %v234_v0  ;;  %v237_v3 = vld [vmem:[%s312_s1 + $0x20] sm:$0xff]   ;;  %v238_v5 = vld [vmem:[%s312_s1 + $0x18] sm:$0xff]   ;;  %v239_v6 = vld [vmem:[%s312_s1 + $0x10] sm:$0xff]  }
   0x3   :  { %215 = vmatpush3.bf16.msra.mxu0 %v234_v0  ;;  %v242_v4 = vld [vmem:[%s313_s0] sm:$0xff]   ;;  %v240_v7 = vld [vmem:[%s312_s1 + $0x8] sm:$0xff]  }
   0x4   :  { %216 = vmatprep.subr.bf16.mxu0 %v235_v1  ;;  %230 = vmatprep.mubr.bf16.mxu0 %v242_v4  ;;  %v241_v8 = vld [vmem:[%s312_s1] sm:$0xff]   ;;  %v243_v9 = vld [vmem:[%s313_s0 + $0x8] sm:$0xff]  }
   0x5   :  { %v203_v10 = vld [vmem:[%s314_s2 + $0x8] sm:$0xff]   ;;  %v196_v11 = vld [vmem:[%s314_s2] sm:$0xff]  }
   0x6   :  { %v201_v12 = vunpack.c.l.bf16 %v203_v10  ;;  %v197_v13 = vunpack.c.l.bf16 %v196_v11  ;;  %v202_v16 = vunpack.c.h.bf16 %v203_v10  ;;  %v198_v20 = vunpack.c.h.bf16 %v196_v11 }
   0x7   :  { %217 = vmatpush3.bf16.msra.mxu0 %v235_v1 }
   0x8   :  { %218 = vmatprep.subr.bf16.mxu0 %v236_v2 }
   0xb   :  { %219 = vmatpush3.bf16.msra.mxu0 %v236_v2 }
   0xc   :  { %220 = vmatprep.subr.bf16.mxu0 %v237_v3 }
   0xf   :  { %221 = vmatpush3.bf16.msra.mxu0 %v237_v3 }
  0x10   :  { %222 = vmatprep.subr.bf16.mxu0 %v238_v5 }
  0x13   :  { %223 = vmatpush3.bf16.msra.mxu0 %v238_v5 }
  0x14   :  { %224 = vmatprep.subr.bf16.mxu0 %v239_v6 }
  0x17   :  { %225 = vmatpush3.bf16.msra.mxu0 %v239_v6 }
  0x18   :  { %226 = vmatprep.subr.bf16.mxu0 %v240_v7 }
  0x1b   :  { %227 = vmatpush3.bf16.msra.mxu0 %v240_v7 }
  0x1c   :  { %228 = vmatprep.subr.bf16.mxu0 %v241_v8 }
  0x1f   :  { %229 = vmatpush3.bf16.msra.mxu0 %v241_v8 }
  0x22   :  { %231 = vmatmul.mubr.bf16.vlgmr.msra.gmra.mxu0 %v243_v9 }
  0xe2   :  { %v232_v14 = vpop.f32.mrf.mxu0 }
  0xe3   :  { %v146_v15 = vadd.f32 %v232_v14, %v201_v12 }
  0xe4   :  { %v137_v17 = vpop.f32.mrf.mxu0 }
  0xe5   :  { %v193_v18 = vpack.c.bf16 %v146_v15, %v146_v15  ;;  %v138_v19 = vadd.f32 %v197_v13, %v137_v17 }
  0xe6   :  { %v233_v21 = vpop.f32.mrf.mxu0 }
  0xe7   :  { %171 = vst.msk [vmem:[%s315_s3 + $0x8] sm:$0xf] %vm168_vm0, %v193_v18  ;;  %v191_v22 = vpack.c.bf16 %v138_v19, %v138_v19  ;;  %v149_v23 = vadd.f32 %v233_v21, %v202_v16 }
  0xe8   :  { %v140_v24 = vpop.f32.mrf.mxu0 }
  0xe9   :  { %169 = vst.msk [vmem:[%s315_s3] sm:$0xf] %vm168_vm0, %v191_v22  ;;  %v194_v25 = vpack.c.bf16 %v149_v23, %v149_v23  ;;  %v141_v26 = vadd.f32 %v198_v20, %v140_v24 }
  0xeb   :  { %172 = vst.msk [vmem:[%s315_s3 + $0xc] sm:$0xf] %vm168_vm0, %v194_v25  ;;  %v192_v27 = vpack.c.bf16 %v141_v26, %v141_v26 }
  0xed   :  { %170 = vst.msk [vmem:[%s315_s3 + $0x4] sm:$0xf] %vm168_vm0, %v192_v27 }

// kernel: t5_token_classifier_forward.21
= control target key start
LH: loop header
LB: loop body
LE: loop exit
PB: predicated region body
PF: predicated region fallthrough
CT: control target
= control target key end

     0   :  { %vm36_vm0 = vcmask 523264   ;;  %s459_s0 = inlined_call_operand.vmem [shape: bf16[32,64], index: 0, kind: input, shape index: {}]   ;;  %s460_s2 = inlined_call_operand.vmem [shape: bf16[64,64], index: 2, kind: input, shape index: {}]   ;;  %s461_s1 = inlined_call_operand.vmem [shape: f32[1,64], index: 1, kind: input, shape index: {}]   ;;  %s462_s4 = inlined_call_operand.vmem [shape: bf16[64,128], index: 4, kind: input, shape index: {}]   ;;  %s463_s3 = inlined_call_operand.vmem [shape: f32[1,64], index: 3, kind: input, shape index: {}]   ;;  %s464_s5 = inlined_call_operand.vmem [shape: f32[1,128], index: 5, kind: input, shape index: {}]   ;;  %s465_s6 = inlined_call_operand.vmem [shape: f32[32,128], index: 6, kind: output, shape index: {}]  }
   0x1   :  { %v304_v0 = vld [vmem:[%s459_s0 + $0x8] sm:$0xff]   ;;  %v297_v1 = vld [vmem:[%s459_s0] sm:$0xff]   ;;  %v341_v14 = vld [vmem:[%s460_s2 + $0x18] sm:$0xff]  }
   0x2   :  { %v302_v2 = vunpack.c.l.bf16 %v304_v0  ;;  %v298_v3 = vunpack.c.l.bf16 %v297_v1  ;;  %v303_v4 = vunpack.c.h.bf16 %v304_v0  ;;  %v299_v5 = vunpack.c.h.bf16 %v297_v1  ;;  %v342_v15 = vld [vmem:[%s460_s2 + $0x10] sm:$0xff]   ;;  %317 = vmatprep.subr.bf16.mxu0 %v341_v14  ;;  %v343_v16 = vld [vmem:[%s460_s2 + $0x8] sm:$0xff]   ;;  %v344_v17 = vld [vmem:[%s460_s2] sm:$0xff]  }
   0x3   :  { %318 = vmatpush3.bf16.msra.mxu0 %v341_v14  ;;  %v281_v35 = vld [vmem:[%s461_s1] ss:$0 sm:$0xff]  ;;  %v345_v45 = vld [vmem:[%s462_s4 + $0x18] sm:$0xff]   ;;  %v346_v46 = vld [vmem:[%s462_s4 + $0x10] sm:$0xff]  }
   0x4   :  { %v34_v6 = vmul.f32 %v302_v2, %v302_v2  ;;  %v32_v7 = vmul.f32 %v298_v3, %v298_v3  ;;  %v35_v8 = vmul.f32 %v303_v4, %v303_v4  ;;  %v33_v9 = vmul.f32 %v299_v5, %v299_v5  ;;  %319 = vmatprep.subr.bf16.mxu0 %v342_v15  ;;  %v347_v47 = vld [vmem:[%s462_s4 + $0x8] sm:$0xff]   ;;  %v348_v48 = vld [vmem:[%s462_s4] sm:$0xff]  }
   0x5   :  { %329 = vmatprep.subr.bf16.mxu1 %v345_v45  ;;  %v282_v50 = vld [vmem:[%s463_s3] ss:$0 sm:$0xff] }
   0x6   :  { %v43_v10 = vsel %vm36_vm0, %v34_v6, 0.0  ;;  %v37_v11 = vsel %vm36_vm0, %v32_v7, 0.0  ;;  %v46_v12 = vsel %vm36_vm0, %v35_v8, 0.0  ;;  %v40_v13 = vsel %vm36_vm0, %v33_v9, 0.0  ;;  %330 = vmatpush3.bf16.msra.mxu1 %v345_v45  ;;  %v289_v0 = vld [vmem:[%s464_s5] ss:$0 sm:$0xff] }
   0x7   :  { %44 = vadd.xlane.f32.xlu1 %v43_v10  ;;  %38 = vadd.xlane.f32.xlu0 %v37_v11 }
   0x8   :  { %320 = vmatpush3.bf16.msra.mxu0 %v342_v15  ;;  %331 = vmatprep.subr.bf16.mxu1 %v346_v46 }
   0x9   :  { %321 = vmatprep.subr.bf16.mxu0 %v343_v16 }
   0xa   :  { %332 = vmatpush3.bf16.msra.mxu1 %v346_v46 }
   0xb   :  { %47 = vadd.xlane.f32.xlu1 %v46_v12  ;;  %41 = vadd.xlane.f32.xlu0 %v40_v13 }
   0xc   :  { %322 = vmatpush3.bf16.msra.mxu0 %v343_v16  ;;  %333 = vmatprep.subr.bf16.mxu1 %v347_v47 }
   0xd   :  { %323 = vmatprep.subr.bf16.mxu0 %v344_v17 }
   0xe   :  { %334 = vmatpush3.bf16.msra.mxu1 %v347_v47 }
   0xf   :  { %335 = vmatprep.subr.bf16.mxu1 %v348_v48 }
  0x10   :  { %324 = vmatpush3.bf16.msra.mxu0 %v344_v17 }
  0x12   :  { %336 = vmatpush3.bf16.msra.mxu1 %v348_v48 }
  0x90   :  { %v45_v18 = vpop.xlane.xlu1 %44  ;;  %v39_v19 = vpop.xlane.xlu0 %38 }
  0x91   :  { %v52_v20 = vmul.f32 0.015625, %v45_v18  ;;  %v50_v21 = vmul.f32 0.015625, %v39_v19 }
  0x93   :  { %v56_v22 = vadd.f32 1e-06, %v52_v20  ;;  %v54_v23 = vadd.f32 1e-06, %v50_v21 }
  0x94   :  { %v48_v24 = vpop.xlane.xlu1 %47  ;;  %v42_v25 = vpop.xlane.xlu0 %41 }
  0x95   :  { %349 = vrsqrt.f32 %v56_v22  ;;  %v53_v26 = vmul.f32 0.015625, %v48_v24  ;;  %v51_v27 = vmul.f32 0.015625, %v42_v25 }
  0x96   :  { %351 = vrsqrt.f32 %v54_v23 }
  0x97   :  { %v57_v28 = vadd.f32 1e-06, %v53_v26  ;;  %v55_v29 = vadd.f32 1e-06, %v51_v27 }
  0x99   :  { %353 = vrsqrt.f32 %v57_v28 }
  0x9a   :  { %355 = vrsqrt.f32 %v55_v29 }
  0xa2   :  { %v350_v30 = vpop.eup %349 }
  0xa3   :  { %v352_v31 = vpop.eup %351  ;;  %v64_v32 = vmul.f32 %v350_v30, %v302_v2 }
  0xa4   :  { %v62_v34 = vmul.f32 %v352_v31, %v298_v3 }
  0xa5   :  { %v75_v39 = vmul.f32 %v281_v35, %v64_v32 }
  0xa6   :  { %v354_v33 = vpop.eup %353  ;;  %v73_v41 = vmul.f32 %v281_v35, %v62_v34 }
  0xa7   :  { %v356_v36 = vpop.eup %355  ;;  %v65_v37 = vmul.f32 %v354_v33, %v303_v4 }
  0xa8   :  { %v63_v38 = vmul.f32 %v356_v36, %v299_v5 }
  0xa9   :  { %v76_v40 = vmul.f32 %v281_v35, %v65_v37 }
  0xaa   :  { %v74_v42 = vmul.f32 %v281_v35, %v63_v38 }
  0xab   :  { %v78_v43 = vpack.c.bf16 %v76_v40, %v75_v39 }
  0xac   :  { %v77_v44 = vpack.c.bf16 %v74_v42, %v73_v41 }
  0xae   :  { %325 = vmatprep.mubr.msk.bf16.mxu0 %vm36_vm0, %v77_v44 }
  0xaf   :  { %326 = vmatmul.mubr.msk.bf16.vlgmr.msra.gmra.mxu0 %vm36_vm0, %v78_v43 }
 0x16f   :  { %v327_v49 = vpop.f32.mrf.mxu0 }
 0x170   :  { %v167_v55 = vadd.f32 %v327_v49, %v282_v50 }
 0x171   :  { %v158_v51 = vpop.f32.mrf.mxu0 }
 0x172   :  { %v159_v52 = vadd.f32 %v282_v50, %v158_v51 }
 0x173   :  { %v328_v53 = vpop.f32.mrf.mxu0 }
 0x174   :  { %v170_v54 = vadd.f32 %v328_v53, %v282_v50  ;;  %357 = vtanh.f32 %v159_v52 }
 0x175   :  { %v161_v56 = vpop.f32.mrf.mxu0 }
 0x176   :  { %v162_v57 = vadd.f32 %v282_v50, %v161_v56  ;;  %359 = vtanh.f32 %v170_v54 }
 0x178   :  { %361 = vtanh.f32 %v162_v57 }
 0x179   :  { %363 = vtanh.f32 %v167_v55 }
 0x181   :  { %v358_v58 = vpop.eup %357 }
 0x183   :  { %v360_v59 = vpop.eup %359 }
 0x185   :  { %v362_v60 = vpop.eup %361 }
 0x186   :  { %v364_v61 = vpop.eup %363  ;;  %v177_v62 = vpack.c.bf16 %v362_v60, %v358_v58 }
 0x187   :  { %v178_v63 = vpack.c.bf16 %v360_v59, %v364_v61 }
 0x188   :  { %337 = vmatprep.mubr.msk.bf16.mxu1 %vm36_vm0, %v177_v62 }
 0x189   :  { %338 = vmatmul.mubr.msk.bf16.vlgmr.msra.gmra.mxu1 %vm36_vm0, %v178_v63 }
 0x249   :  { %v339_v1 = vpop.f32.mrf.mxu1 }
 0x24a   :  { %v267_v2 = vadd.f32 %v339_v1, %v289_v0 }
 0x24b   :  { %v258_v3 = vpop.f32.mrf.mxu1 }
 0x24c   :  { %275 = vst [vmem:[%s465_s6 + $0x10] sm:$0xff] %v267_v2  ;;  %v259_v4 = vadd.f32 %v289_v0, %v258_v3 }
 0x24d   :  { %v340_v5 = vpop.f32.mrf.mxu1 }
 0x24e   :  { %273 = vst [vmem:[%s465_s6] sm:$0xff] %v259_v4  ;;  %v270_v6 = vadd.f32 %v340_v5, %v289_v0 }
 0x24f   :  { %v261_v7 = vpop.f32.mrf.mxu1 }
 0x250   :  { %276 = vst [vmem:[%s465_s6 + $0x18] sm:$0xff] %v270_v6  ;;  %v262_v8 = vadd.f32 %v289_v0, %v261_v7 }
 0x252   :  { %274 = vst [vmem:[%s465_s6 + $0x8] sm:$0xff] %v262_v8 }

</bundles_post_ra>
